<compile_context>
chip_gen: v7x
topology: tpu7x:2x2x1
jax: 0.10.0
libtpu: 0.0.40
codegen_flags: <defaults>
</compile_context>

<pallas_src>
import functools
import math

import jax
import jax.numpy as jnp
from jax.experimental import pallas as pl
from jax.experimental.pallas import tpu as pltpu

COMPUTE_DTYPE = jnp.bfloat16
VMEM_LIMIT_BYTES = 48 * 1024 * 1024  # headroom on v7x (64 MiB), fine on v5e/v6e


# ----------------------------------------------------------------------------
# helpers: tile-size selection (respect the (8, 128) block constraints)
# ----------------------------------------------------------------------------
def _round_up(x, m):
    return (x + m - 1) // m * m


def _pick_tm(m):
    m8 = _round_up(m, 8)
    return m8 if m8 <= 256 else 256


def _pick_tk(k):
    # single K tile when small; otherwise a 128-multiple divisor (no K padding).
    if k <= 512:
        return k
    for cand in (512, 384, 256, 128):
        if k % cand == 0:
            return cand
    return k


def _pick_tn(n):
    if n <= 512:
        return n
    for cand in (512, 384, 256, 128):
        if n % cand == 0:
            return cand
    return n


def _heads_per_step(heads, dh):
    # pick a head-group size so the attention block's last dim is lane-dense
    # (multiple of 128) or equals the full feature dim D.
    if dh % 128 == 0:
        return 1
    if 128 % dh == 0:
        hp = 128 // dh
        if heads % hp == 0:
            return hp
    return heads  # hp * dh == D == full last dim


# ----------------------------------------------------------------------------
# Pallas kernels
# ----------------------------------------------------------------------------
def _matmul_kernel(*refs, activation, has_residual):
    """Tiled y = x @ w + b (+ residual) with K-reduction accumulator."""
    if has_residual:
        x_ref, w_ref, b_ref, r_ref, o_ref, acc_ref = refs
    else:
        x_ref, w_ref, b_ref, o_ref, acc_ref = refs
        r_ref = None
    k = pl.program_id(2)

    @pl.when(k == 0)
    def _init():
        acc_ref[...] = jnp.zeros_like(acc_ref)

    acc_ref[...] += jnp.dot(x_ref[...], w_ref[...],
                            preferred_element_type=jnp.float32)

    @pl.when(k == pl.num_programs(2) - 1)
    def _finalize():
        out = acc_ref[...] + b_ref[...].astype(jnp.float32)
        if activation == "quick_gelu":
            out = out * jax.nn.sigmoid(1.702 * out)
        if r_ref is not None:
            out = out + r_ref[...].astype(jnp.float32)
        o_ref[...] = out.astype(o_ref.dtype)


def _ln_matmul_kernel(x_ref, g_ref, bg_ref, w_ref, b_ref, o_ref, *, activation):
    """Fused LayerNorm(x) @ w + b (single K tile); optional QuickGELU."""
    x = x_ref[...].astype(jnp.float32)
    mu = jnp.mean(x, axis=-1, keepdims=True)
    var = jnp.mean(jnp.square(x - mu), axis=-1, keepdims=True)
    xn = (x - mu) * jax.lax.rsqrt(var + 1e-5)
    xn = xn * g_ref[...].astype(jnp.float32) + bg_ref[...].astype(jnp.float32)
    acc = jnp.dot(xn.astype(w_ref.dtype), w_ref[...],
                  preferred_element_type=jnp.float32)
    out = acc + b_ref[...].astype(jnp.float32)
    if activation == "quick_gelu":
        out = out * jax.nn.sigmoid(1.702 * out)
    o_ref[...] = out.astype(o_ref.dtype)


def _layernorm_kernel(x_ref, g_ref, b_ref, o_ref):
    x = x_ref[...].astype(jnp.float32)
    mu = jnp.mean(x, axis=-1, keepdims=True)
    var = jnp.mean(jnp.square(x - mu), axis=-1, keepdims=True)
    y = (x - mu) * jax.lax.rsqrt(var + 1e-5)
    y = y * g_ref[...].astype(jnp.float32) + b_ref[...].astype(jnp.float32)
    o_ref[...] = y.astype(o_ref.dtype)


def _mha_kernel(q_ref, k_ref, v_ref, o_ref, *, hp, dh, scale):
    """Softmax attention for one batch element / one lane-dense head group.

    q/k/v blocks are [1, S, hp*dh] lane-group windows of the fused QKV tensor
    [B, S, 3D] (same array passed three times with shifted index maps), so no
    host-side q/k/v slice copies are ever materialized.  Output is written
    lane-dense straight into [B, S, D].
    """
    # pre-scale q (S*hp*dh elements) instead of the S*S score matrix
    q = (q_ref[0].astype(jnp.float32) * scale).astype(q_ref.dtype)
    k = k_ref[0]
    v = v_ref[0]
    outs = []
    for h in range(hp):                      # unrolled, hp is tiny (1..4)
        lo, hi = h * dh, (h + 1) * dh
        qh, kh, vh = q[:, lo:hi], k[:, lo:hi], v[:, lo:hi]
        # contract last dims of both operands (no explicit k.T / XLU transpose)
        s = jax.lax.dot_general(qh, kh, (((1,), (1,)), ((), ())),
                                preferred_element_type=jnp.float32)   # [S, S]
        m = jnp.max(s, axis=-1, keepdims=True)
        p = jnp.exp(s - m)
        p = p * pl.reciprocal(jnp.sum(p, axis=-1, keepdims=True), approx=True)
        outs.append(jnp.dot(p.astype(vh.dtype), vh,
                            preferred_element_type=jnp.float32))      # [S, dh]
    o = outs[0] if hp == 1 else jnp.concatenate(outs, axis=-1)
    o_ref[0] = o.astype(o_ref.dtype)


# ----------------------------------------------------------------------------
# Pallas wrappers
# ----------------------------------------------------------------------------
def linear(x, w, b=None, *, activation=None, ln=None, residual=None):
    """y = (LN(x) if ln else x) @ w + b [+ residual], optional fused QuickGELU."""
    K, N = w.shape
    lead = x.shape[:-1]
    x2 = x.reshape(-1, K)
    M = x2.shape[0]
    if b is None:
        b = jnp.zeros((N,), jnp.float32)
    b2 = b.reshape(1, N)

    tm = _pick_tm(M)
    tn = _pick_tn(N)
    m_pad = _round_up(M, tm)
    if m_pad != M:
        x2 = jnp.pad(x2, ((0, m_pad - M), (0, 0)))
    nm, nn = m_pad // tm, N // tn

    if ln is not None:
        assert residual is None
        # LN statistics need the full feature dim -> single K tile.
        g, bg = ln
        out = pl.pallas_call(
            functools.partial(_ln_matmul_kernel, activation=activation),
            grid=(nm, nn),
            in_specs=[
                pl.BlockSpec((tm, K), lambda i, j: (i, 0)),
                pl.BlockSpec((1, K), lambda i, j: (0, 0)),
                pl.BlockSpec((1, K), lambda i, j: (0, 0)),
                pl.BlockSpec((K, tn), lambda i, j: (0, j)),
                pl.BlockSpec((1, tn), lambda i, j: (0, j)),
            ],
            out_specs=pl.BlockSpec((tm, tn), lambda i, j: (i, j)),
            out_shape=jax.ShapeDtypeStruct((m_pad, N), x.dtype),
            compiler_params=pltpu.CompilerParams(
                dimension_semantics=("parallel", "parallel"),
                vmem_limit_bytes=VMEM_LIMIT_BYTES),
        )(x2, g.reshape(1, K), bg.reshape(1, K), w, b2)
    else:
        tk = _pick_tk(K)
        nk = K // tk
        has_residual = residual is not None
        operands = [x2, w, b2]
        in_specs = [
            pl.BlockSpec((tm, tk), lambda i, j, k: (i, k)),
            pl.BlockSpec((tk, tn), lambda i, j, k: (k, j)),
            pl.BlockSpec((1, tn), lambda i, j, k: (0, j)),
        ]
        if has_residual:
            r2 = residual.reshape(-1, N)
            if m_pad != M:
                r2 = jnp.pad(r2, ((0, m_pad - M), (0, 0)))
            operands.append(r2)
            in_specs.append(pl.BlockSpec((tm, tn), lambda i, j, k: (i, j)))
        out = pl.pallas_call(
            functools.partial(_matmul_kernel, activation=activation,
                              has_residual=has_residual),
            grid=(nm, nn, nk),
            in_specs=in_specs,
            out_specs=pl.BlockSpec((tm, tn), lambda i, j, k: (i, j)),
            out_shape=jax.ShapeDtypeStruct((m_pad, N), x.dtype),
            scratch_shapes=[pltpu.VMEM((tm, tn), jnp.float32)],
            compiler_params=pltpu.CompilerParams(
                dimension_semantics=("parallel", "parallel", "arbitrary"),
                vmem_limit_bytes=VMEM_LIMIT_BYTES),
        )(*operands)

    if m_pad != M:
        out = out[:M]
    return out.reshape(*lead, N)


def layernorm(x, g, b):
    """Row-tiled LayerNorm (standalone; used for ln_pre)."""
    D = x.shape[-1]
    lead = x.shape[:-1]
    x2 = x.reshape(-1, D)
    M = x2.shape[0]
    tm = _pick_tm(M)
    m_pad = _round_up(M, tm)
    if m_pad != M:
        x2 = jnp.pad(x2, ((0, m_pad - M), (0, 0)))
    out = pl.pallas_call(
        _layernorm_kernel,
        grid=(m_pad // tm,),
        in_specs=[pl.BlockSpec((tm, D), lambda i: (i, 0)),
                  pl.BlockSpec((1, D), lambda i: (0, 0)),
                  pl.BlockSpec((1, D), lambda i: (0, 0))],
        out_specs=pl.BlockSpec((tm, D), lambda i: (i, 0)),
        out_shape=jax.ShapeDtypeStruct((m_pad, D), x.dtype),
        compiler_params=pltpu.CompilerParams(
            dimension_semantics=("parallel",),
            vmem_limit_bytes=VMEM_LIMIT_BYTES),
    )(x2, g.reshape(1, D), b.reshape(1, D))
    if m_pad != M:
        out = out[:M]
    return out.reshape(*lead, D)


def mha_attention(qkv, heads):
    """qkv: [B, S, 3D] fused projection -> [B, S, D] attention output.

    The same qkv array is passed three times with lane-group-shifted index
    maps (q at group g, k at g+G, v at g+2G), so no q/k/v slices are ever
    materialized in HBM.
    """
    B, S, D3 = qkv.shape
    D = D3 // 3
    dh = D // heads
    hp = _heads_per_step(heads, dh)
    G = heads // hp                       # lane-dense head groups per D
    scale = 1.0 / math.sqrt(dh)
    blk = (1, S, hp * dh)
    q_spec = pl.BlockSpec(blk, lambda b, g: (b, 0, g))
    k_spec = pl.BlockSpec(blk, lambda b, g: (b, 0, g + G))
    v_spec = pl.BlockSpec(blk, lambda b, g: (b, 0, g + 2 * G))
    o_spec = pl.BlockSpec(blk, lambda b, g: (b, 0, g))
    # TODO(synk): KV-tiled (flash-style online-softmax) variant for long video
    # sequences (S ~ 1.5k+) to respect v7x's 64 MiB VMEM; full S x S per head
    # group is fine at these shapes.
    return pl.pallas_call(
        functools.partial(_mha_kernel, hp=hp, dh=dh, scale=scale),
        grid=(B, G),
        in_specs=[q_spec, k_spec, v_spec],
        out_specs=o_spec,
        out_shape=jax.ShapeDtypeStruct((B, S, D), qkv.dtype),
        compiler_params=pltpu.CompilerParams(
            dimension_semantics=("parallel", "parallel"),
            vmem_limit_bytes=VMEM_LIMIT_BYTES),
    )(qkv, qkv, qkv)


# ----------------------------------------------------------------------------
# Model
# ----------------------------------------------------------------------------
def _normal(key, shape, std=0.02, dtype=jnp.float32):
    return (std * jax.random.normal(key, shape, jnp.float32)).astype(dtype)


def init_params(key, *, C, P, D, depth, mlp_hidden, output_dim, num_prompts,
                num_classes, num_patches, num_frames):
    keys = jax.random.split(key, 7 + depth * 4)
    it = iter(keys)
    bf = COMPUTE_DTYPE
    params = {
        "conv_w": _normal(next(it), (C * P * P, D), dtype=bf),   # conv1 (bias=False)
        "cls": _normal(next(it), (D,), dtype=bf),                # class_embedding
        "pos": _normal(next(it), (num_patches + 1, D), dtype=bf),
        "temporal": _normal(next(it), (num_frames, D), dtype=bf),
        "prompt": _normal(next(it), (num_prompts, D), dtype=bf),
        "ln_pre_g": jnp.ones((D,), jnp.float32),
        "ln_pre_b": jnp.zeros((D,), jnp.float32),
        "ln_post_g": jnp.ones((D,), jnp.float32),
        "ln_post_b": jnp.zeros((D,), jnp.float32),
        "proj": _normal(next(it), (D, output_dim)),              # CLIP visual proj
        "head_w": _normal(next(it), (D, num_classes)),           # resPrompt head
        "head_b": jnp.zeros((num_classes,), jnp.float32),
    }
    layers = []
    for _ in range(depth):
        layers.append({
            "ln1_g": jnp.ones((D,), jnp.float32),
            "ln1_b": jnp.zeros((D,), jnp.float32),
            "wqkv": _normal(next(it), (D, 3 * D), dtype=bf),
            "bqkv": jnp.zeros((3 * D,), jnp.float32),
            "wo": _normal(next(it), (D, D), dtype=bf),
            "bo": jnp.zeros((D,), jnp.float32),
            "ln2_g": jnp.ones((D,), jnp.float32),
            "ln2_b": jnp.zeros((D,), jnp.float32),
            "wfc": _normal(next(it), (D, mlp_hidden), dtype=bf),
            "bfc": jnp.zeros((mlp_hidden,), jnp.float32),
            "wproj": _normal(next(it), (mlp_hidden, D), dtype=bf),
            "bproj": jnp.zeros((D,), jnp.float32),
        })
    params["layers"] = layers
    return params


def transformer_block(x, p, heads):
    # Attention sub-block: LN1 fused into the QKV projection kernel;
    # attention reads the fused QKV tensor directly (no q/k/v slice copies);
    # the residual add is fused into the out-projection kernel.
    qkv = linear(x, p["wqkv"], p["bqkv"], ln=(p["ln1_g"], p["ln1_b"]))  # [B, S, 3D]
    attn = mha_attention(qkv, heads)                                     # [B, S, D]
    x = linear(attn, p["wo"], p["bo"], residual=x)
    # MLP sub-block: LN2 + QuickGELU fused into the fc matmul kernel;
    # residual add fused into the projection kernel.
    h = linear(x, p["wfc"], p["bfc"], activation="quick_gelu",
               ln=(p["ln2_g"], p["ln2_b"]))
    x = linear(h, p["wproj"], p["bproj"], residual=x)
    return x


def respromptclip_forward(params, x, *, patch_size, heads, num_prompts):
    """x: [B, C, T, H, W] (PyTorch NCTHW video).  Returns (x_resPrompt, x_cls)."""
    B, C, T, H, W = x.shape
    P = patch_size
    D = params["cls"].shape[0]
    nh, nw = H // P, W // P
    N = nh * nw

    # --- patch embedding (conv stride==kernel -> exact matmul) ---------------
    xt = jnp.transpose(x, (0, 2, 1, 3, 4)).reshape(B * T, C, H, W)
    patches = xt.reshape(B * T, C, nh, P, nw, P)
    patches = jnp.transpose(patches, (0, 2, 4, 1, 3, 5)).reshape(B * T, N, C * P * P)
    patches = patches.astype(COMPUTE_DTYPE)
    emb = linear(patches, params["conv_w"])                       # [B*T, N, D]

    # --- cls token + spatial positional embedding ----------------------------
    cls = jnp.broadcast_to(params["cls"][None, None, :], (B * T, 1, D))
    tok = jnp.concatenate([cls, emb], axis=1) + params["pos"][None]   # [B*T, N+1, D]

    # --- joint space-time sequence + temporal embedding + prompt tokens ------
    tok = tok.reshape(B, T, N + 1, D)
    cls_tok = tok[:, 0, :1, :]                                    # [B, 1, D]
    patch_tok = tok[:, :, 1:, :] + params["temporal"][None, :, None, :]
    patch_tok = patch_tok.reshape(B, T * N, D)
    prompts = jnp.broadcast_to(params["prompt"][None], (B, num_prompts, D))
    seq = jnp.concatenate([prompts, cls_tok, patch_tok], axis=1)  # [B, S, D]

    # --- transformer ----------------------------------------------------------
    seq = layernorm(seq, params["ln_pre_g"], params["ln_pre_b"])
    for layer in params["layers"]:
        seq = transformer_block(seq, layer, heads)

    # --- epilogue: only prompt + cls tokens are consumed; M == B*(P+1) rows
    # is far below a tile, so ln_post and the two tiny head matmuls stay in
    # XLA (don't add single-block pallas_calls for M=B rows).
    toks = seq[:, :num_prompts + 1].astype(jnp.float32)
    mu = jnp.mean(toks, axis=-1, keepdims=True)
    var = jnp.mean(jnp.square(toks - mu), axis=-1, keepdims=True)
    toks = (toks - mu) * jax.lax.rsqrt(var + 1e-5)
    toks = toks * params["ln_post_g"] + params["ln_post_b"]
    x_cls = toks[:, num_prompts] @ params["proj"]                           # [B, output_dim]
    x_resprompt = toks[:, :num_prompts] @ params["head_w"] + params["head_b"]
    x_resprompt = x_resprompt.mean(axis=1)                                  # [B, num_classes]
    return x_resprompt, x_cls


def clip_base_patch16_224_1P_forward(params, x, *, patch_size, heads, num_prompts):
    # The PyTorch wrapper returns only x_resPrompt.
    x_resprompt, _ = respromptclip_forward(
        params, x, patch_size=patch_size, heads=heads, num_prompts=num_prompts)
    return x_resprompt


# ----------------------------------------------------------------------------
# Main
# ----------------------------------------------------------------------------
if __name__ == "__main__":
    # Scaled-down config consistent with the module: patch_size=16, num_prompts=1,
    # joint space-time attention; width/layers/heads/output_dim/num_classes reduced.
    B, C, T, H, W = 2, 3, 2, 32, 32       # img_size=32 -> 2x2=4 patches/frame
    PATCH = 16
    WIDTH = 128                           # head_dim 64, like the real model
    DEPTH = 2
    HEADS = 2
    OUTPUT_DIM = 32
    NUM_PROMPTS = 1
    NUM_CLASSES = 8
    NUM_PATCHES = (H // PATCH) * (W // PATCH)

    key = jax.random.PRNGKey(0)
    kx, kp = jax.random.split(key)
    x = jax.random.normal(kx, (B, C, T, H, W), jnp.float32)
    params = init_params(
        kp, C=C, P=PATCH, D=WIDTH, depth=DEPTH, mlp_hidden=4 * WIDTH,
        output_dim=OUTPUT_DIM, num_prompts=NUM_PROMPTS, num_classes=NUM_CLASSES,
        num_patches=NUM_PATCHES, num_frames=T)

    fwd = jax.jit(functools.partial(
        clip_base_patch16_224_1P_forward,
        patch_size=PATCH, heads=HEADS, num_prompts=NUM_PROMPTS))
    out = fwd(params, x)
    jax.block_until_ready(out)
    assert out.shape == (B, NUM_CLASSES) and out.dtype == jnp.float32
    print("KERNEL_OK")
</pallas_src>

<mosaic_0001>
module attributes {stable_mosaic.version = 11 : i64} {
  func.func @_matmul_kernel(%arg0: i32, %arg1: i32, %arg2: i32, %arg3: memref<16x384xbf16, #tpu.memory_space<vmem>>, %arg4: memref<384x128xbf16, #tpu.memory_space<vmem>>, %arg5: memref<1x128xf32, #tpu.memory_space<vmem>>, %arg6: memref<16x128xbf16, #tpu.memory_space<vmem>>, %arg7: memref<16x128xf32, #tpu.memory_space<vmem>>) attributes {dimension_semantics = [#tpu.dimension_semantics<parallel>, #tpu.dimension_semantics<parallel>, #tpu.dimension_semantics<arbitrary>], iteration_bounds = array<i64: 1, 1, 2>, scalar_prefetch = 0 : i64, scratch_operands = 1 : i64, tpu.core_type = #tpu.core_type<tc>, window_params = [{transform_indices = @transform_0, window_bounds = array<i64: 16, 384>}, {transform_indices = @transform_1, window_bounds = array<i64: 384, 128>}, {transform_indices = @transform_2, window_bounds = array<i64: 1, 128>}, {transform_indices = @transform_3, window_bounds = array<i64: 16, 128>}]} {
    %c0_i32 = arith.constant 0 : i32
    %0 = arith.cmpi eq, %arg2, %c0_i32 : i32
    %1 = arith.extui %0 : i1 to i32
    %c0_i32_0 = arith.constant 0 : i32
    %2 = arith.cmpi ne, %1, %c0_i32_0 : i32
    scf.if %2 {
      %cst_9 = arith.constant 0.000000e+00 : f32
      %12 = vector.broadcast %cst_9 : f32 to vector<16x128xf32>
      %c0_10 = arith.constant 0 : index
      %c0_11 = arith.constant 0 : index
      %13 = vector.load %arg7[%c0_10, %c0_11] : memref<16x128xf32, #tpu.memory_space<vmem>>, vector<16x128xf32>
      tpu.vector_store %arg7[%c0_10, %c0_11], %12 {strides = array<i32>} : memref<16x128xf32, #tpu.memory_space<vmem>>, vector<16x128xf32>,
    } else {
    }
    %c0 = arith.constant 0 : index
    %c0_1 = arith.constant 0 : index
    %3 = vector.load %arg7[%c0, %c0_1] : memref<16x128xf32, #tpu.memory_space<vmem>>, vector<16x128xf32>
    %c0_2 = arith.constant 0 : index
    %c0_3 = arith.constant 0 : index
    %4 = vector.load %arg3[%c0_2, %c0_3] : memref<16x384xbf16, #tpu.memory_space<vmem>>, vector<16x384xbf16>
    %c0_4 = arith.constant 0 : index
    %c0_5 = arith.constant 0 : index
    %5 = vector.load %arg4[%c0_4, %c0_5] : memref<384x128xbf16, #tpu.memory_space<vmem>>, vector<384x128xbf16>
    %cst = arith.constant dense<0.000000e+00> : vector<16x128xf32>
    %6 = tpu.matmul %4, %5, %cst {dimension_numbers = #tpu.dot_dimension_numbers<[1], [0], [0], [1], [0, 0, 1, 1], [], []>} : vector<16x384xbf16>, vector<384x128xbf16>, vector<16x128xf32> -> vector<16x128xf32>
    %7 = arith.addf %3, %6 : vector<16x128xf32>
    %c0_6 = arith.constant 0 : index
    %c0_7 = arith.constant 0 : index
    %8 = vector.load %arg7[%c0_6, %c0_7] : memref<16x128xf32, #tpu.memory_space<vmem>>, vector<16x128xf32>
    tpu.vector_store %arg7[%c0_6, %c0_7], %7 {strides = array<i32>} : memref<16x128xf32, #tpu.memory_space<vmem>>, vector<16x128xf32>,
    %c1_i32 = arith.constant 1 : i32
    %9 = arith.cmpi eq, %arg2, %c1_i32 : i32
    %10 = arith.extui %9 : i1 to i32
    %c0_i32_8 = arith.constant 0 : i32
    %11 = arith.cmpi ne, %10, %c0_i32_8 : i32
    scf.if %11 {
      %c0_9 = arith.constant 0 : index
      %c0_10 = arith.constant 0 : index
      %12 = vector.load %arg7[%c0_9, %c0_10] : memref<16x128xf32, #tpu.memory_space<vmem>>, vector<16x128xf32>
      %c0_11 = arith.constant 0 : index
      %c0_12 = arith.constant 0 : index
      %13 = vector.load %arg5[%c0_11, %c0_12] : memref<1x128xf32, #tpu.memory_space<vmem>>, vector<1x128xf32>
      %14 = vector.broadcast %13 : vector<1x128xf32> to vector<16x128xf32>
      %15 = arith.addf %12, %14 : vector<16x128xf32>
      %16 = arith.truncf %15 : vector<16x128xf32> to vector<16x128xbf16>
      %c0_13 = arith.constant 0 : index
      %c0_14 = arith.constant 0 : index
      %17 = vector.load %arg6[%c0_13, %c0_14] : memref<16x128xbf16, #tpu.memory_space<vmem>>, vector<16x128xbf16>
      tpu.vector_store %arg6[%c0_13, %c0_14], %16 {strides = array<i32>} : memref<16x128xbf16, #tpu.memory_space<vmem>>, vector<16x128xbf16>,
    } else {
    }
    return
  }
  func.func @transform_0(%arg0: i32, %arg1: i32, %arg2: i32) -> (i32, i32) {
    %c0_i32 = arith.constant 0 : i32
    return %arg0, %arg2 : i32, i32
  }
  func.func @transform_1(%arg0: i32, %arg1: i32, %arg2: i32) -> (i32, i32) {
    %c0_i32 = arith.constant 0 : i32
    return %arg2, %arg1 : i32, i32
  }
  func.func @transform_2(%arg0: i32, %arg1: i32, %arg2: i32) -> (i32, i32) {
    %c0_i32 = arith.constant 0 : i32
    %c0_i32_0 = arith.constant 0 : i32
    return %c0_i32, %arg1 : i32, i32
  }
  func.func @transform_3(%arg0: i32, %arg1: i32, %arg2: i32) -> (i32, i32) {
    %c0_i32 = arith.constant 0 : i32
    return %arg0, %arg1 : i32, i32
  }
}

module attributes {stable_mosaic.version = 11 : i64} {
  func.func @_layernorm_kernel(%arg0: i32, %arg1: memref<24x128xbf16, #tpu.memory_space<vmem>>, %arg2: memref<1x128xf32, #tpu.memory_space<vmem>>, %arg3: memref<1x128xf32, #tpu.memory_space<vmem>>, %arg4: memref<24x128xbf16, #tpu.memory_space<vmem>>) attributes {dimension_semantics = [#tpu.dimension_semantics<parallel>], iteration_bounds = array<i64: 1>, scalar_prefetch = 0 : i64, scratch_operands = 0 : i64, tpu.core_type = #tpu.core_type<tc>, window_params = [{transform_indices = @transform_0, window_bounds = array<i64: 24, 128>}, {pipeline_mode = #tpu.pipeline_mode<synchronous>, transform_indices = @transform_1, window_bounds = array<i64: 1, 128>}, {pipeline_mode = #tpu.pipeline_mode<synchronous>, transform_indices = @transform_2, window_bounds = array<i64: 1, 128>}, {transform_indices = @transform_3, window_bounds = array<i64: 24, 128>}]} {
    %c0 = arith.constant 0 : index
    %c0_0 = arith.constant 0 : index
    %0 = vector.load %arg1[%c0, %c0_0] : memref<24x128xbf16, #tpu.memory_space<vmem>>, vector<24x128xbf16>
    %1 = arith.extf %0 : vector<24x128xbf16> to vector<24x128xf32>
    %cst = arith.constant dense<0.000000e+00> : vector<24xf32>
    %2 = vector.multi_reduction <add>, %1, %cst [1] : vector<24x128xf32> to vector<24xf32>
    %3 = vector.shape_cast %2 : vector<24xf32> to vector<24x1xf32>
    %cst_1 = arith.constant 1.280000e+02 : f32
    %4 = vector.broadcast %cst_1 : f32 to vector<24x1xf32>
    %5 = arith.divf %3, %4 : vector<24x1xf32>
    %6 = vector.broadcast %5 : vector<24x1xf32> to vector<24x128xf32>
    %7 = arith.subf %1, %6 : vector<24x128xf32>
    %8 = arith.mulf %7, %7 : vector<24x128xf32>
    %cst_2 = arith.constant dense<0.000000e+00> : vector<24xf32>
    %9 = vector.multi_reduction <add>, %8, %cst_2 [1] : vector<24x128xf32> to vector<24xf32>
    %10 = vector.shape_cast %9 : vector<24xf32> to vector<24x1xf32>
    %cst_3 = arith.constant 1.280000e+02 : f32
    %11 = vector.broadcast %cst_3 : f32 to vector<24x1xf32>
    %12 = arith.divf %10, %11 : vector<24x1xf32>
    %13 = vector.broadcast %5 : vector<24x1xf32> to vector<24x128xf32>
    %14 = arith.subf %1, %13 : vector<24x128xf32>
    %cst_4 = arith.constant 9.99999974E-6 : f32
    %15 = vector.broadcast %cst_4 : f32 to vector<24x1xf32>
    %16 = arith.addf %12, %15 : vector<24x1xf32>
    %17 = math.rsqrt %16 : vector<24x1xf32>
    %18 = vector.broadcast %17 : vector<24x1xf32> to vector<24x128xf32>
    %19 = arith.mulf %14, %18 : vector<24x128xf32>
    %c0_5 = arith.constant 0 : index
    %c0_6 = arith.constant 0 : index
    %20 = vector.load %arg2[%c0_5, %c0_6] : memref<1x128xf32, #tpu.memory_space<vmem>>, vector<1x128xf32>
    %21 = vector.broadcast %20 : vector<1x128xf32> to vector<24x128xf32>
    %22 = arith.mulf %19, %21 : vector<24x128xf32>
    %c0_7 = arith.constant 0 : index
    %c0_8 = arith.constant 0 : index
    %23 = vector.load %arg3[%c0_7, %c0_8] : memref<1x128xf32, #tpu.memory_space<vmem>>, vector<1x128xf32>
    %24 = vector.broadcast %23 : vector<1x128xf32> to vector<24x128xf32>
    %25 = arith.addf %22, %24 : vector<24x128xf32>
    %26 = arith.truncf %25 : vector<24x128xf32> to vector<24x128xbf16>
    %c0_9 = arith.constant 0 : index
    %c0_10 = arith.constant 0 : index
    %27 = vector.load %arg4[%c0_9, %c0_10] : memref<24x128xbf16, #tpu.memory_space<vmem>>, vector<24x128xbf16>
    tpu.vector_store %arg4[%c0_9, %c0_10], %26 {strides = array<i32>} : memref<24x128xbf16, #tpu.memory_space<vmem>>, vector<24x128xbf16>,
    return
  }
  func.func @transform_0(%arg0: i32) -> (i32, i32) {
    %c0_i32 = arith.constant 0 : i32
    %c0_i32_0 = arith.constant 0 : i32
    return %arg0, %c0_i32 : i32, i32
  }
  func.func @transform_1(%arg0: i32) -> (i32, i32) {
    %c0_i32 = arith.constant 0 : i32
    %c0_i32_0 = arith.constant 0 : i32
    %c0_i32_1 = arith.constant 0 : i32
    return %c0_i32, %c0_i32_0 : i32, i32
  }
  func.func @transform_2(%arg0: i32) -> (i32, i32) {
    %c0_i32 = arith.constant 0 : i32
    %c0_i32_0 = arith.constant 0 : i32
    %c0_i32_1 = arith.constant 0 : i32
    return %c0_i32, %c0_i32_0 : i32, i32
  }
  func.func @transform_3(%arg0: i32) -> (i32, i32) {
    %c0_i32 = arith.constant 0 : i32
    %c0_i32_0 = arith.constant 0 : i32
    return %arg0, %c0_i32 : i32, i32
  }
}

module attributes {stable_mosaic.version = 11 : i64} {
  func.func @_ln_matmul_kernel(%arg0: i32, %arg1: i32, %arg2: memref<24x128xbf16, #tpu.memory_space<vmem>>, %arg3: memref<1x128xf32, #tpu.memory_space<vmem>>, %arg4: memref<1x128xf32, #tpu.memory_space<vmem>>, %arg5: memref<128x384xbf16, #tpu.memory_space<vmem>>, %arg6: memref<1x384xf32, #tpu.memory_space<vmem>>, %arg7: memref<24x384xbf16, #tpu.memory_space<vmem>>) attributes {dimension_semantics = [#tpu.dimension_semantics<parallel>, #tpu.dimension_semantics<parallel>], iteration_bounds = array<i64: 1, 1>, scalar_prefetch = 0 : i64, scratch_operands = 0 : i64, tpu.core_type = #tpu.core_type<tc>, window_params = [{transform_indices = @transform_0, window_bounds = array<i64: 24, 128>}, {pipeline_mode = #tpu.pipeline_mode<synchronous>, transform_indices = @transform_1, window_bounds = array<i64: 1, 128>}, {pipeline_mode = #tpu.pipeline_mode<synchronous>, transform_indices = @transform_2, window_bounds = array<i64: 1, 128>}, {transform_indices = @transform_3, window_bounds = array<i64: 128, 384>}, {transform_indices = @transform_4, window_bounds = array<i64: 1, 384>}, {transform_indices = @transform_5, window_bounds = array<i64: 24, 384>}]} {
    %c0 = arith.constant 0 : index
    %c0_0 = arith.constant 0 : index
    %0 = vector.load %arg2[%c0, %c0_0] : memref<24x128xbf16, #tpu.memory_space<vmem>>, vector<24x128xbf16>
    %1 = arith.extf %0 : vector<24x128xbf16> to vector<24x128xf32>
    %cst = arith.constant dense<0.000000e+00> : vector<24xf32>
    %2 = vector.multi_reduction <add>, %1, %cst [1] : vector<24x128xf32> to vector<24xf32>
    %3 = vector.shape_cast %2 : vector<24xf32> to vector<24x1xf32>
    %cst_1 = arith.constant 1.280000e+02 : f32
    %4 = vector.broadcast %cst_1 : f32 to vector<24x1xf32>
    %5 = arith.divf %3, %4 : vector<24x1xf32>
    %6 = vector.broadcast %5 : vector<24x1xf32> to vector<24x128xf32>
    %7 = arith.subf %1, %6 : vector<24x128xf32>
    %8 = arith.mulf %7, %7 : vector<24x128xf32>
    %cst_2 = arith.constant dense<0.000000e+00> : vector<24xf32>
    %9 = vector.multi_reduction <add>, %8, %cst_2 [1] : vector<24x128xf32> to vector<24xf32>
    %10 = vector.shape_cast %9 : vector<24xf32> to vector<24x1xf32>
    %cst_3 = arith.constant 1.280000e+02 : f32
    %11 = vector.broadcast %cst_3 : f32 to vector<24x1xf32>
    %12 = arith.divf %10, %11 : vector<24x1xf32>
    %13 = vector.broadcast %5 : vector<24x1xf32> to vector<24x128xf32>
    %14 = arith.subf %1, %13 : vector<24x128xf32>
    %cst_4 = arith.constant 9.99999974E-6 : f32
    %15 = vector.broadcast %cst_4 : f32 to vector<24x1xf32>
    %16 = arith.addf %12, %15 : vector<24x1xf32>
    %17 = math.rsqrt %16 : vector<24x1xf32>
    %18 = vector.broadcast %17 : vector<24x1xf32> to vector<24x128xf32>
    %19 = arith.mulf %14, %18 : vector<24x128xf32>
    %c0_5 = arith.constant 0 : index
    %c0_6 = arith.constant 0 : index
    %20 = vector.load %arg3[%c0_5, %c0_6] : memref<1x128xf32, #tpu.memory_space<vmem>>, vector<1x128xf32>
    %21 = vector.broadcast %20 : vector<1x128xf32> to vector<24x128xf32>
    %22 = arith.mulf %19, %21 : vector<24x128xf32>
    %c0_7 = arith.constant 0 : index
    %c0_8 = arith.constant 0 : index
    %23 = vector.load %arg4[%c0_7, %c0_8] : memref<1x128xf32, #tpu.memory_space<vmem>>, vector<1x128xf32>
    %24 = vector.broadcast %23 : vector<1x128xf32> to vector<24x128xf32>
    %25 = arith.addf %22, %24 : vector<24x128xf32>
    %26 = arith.truncf %25 : vector<24x128xf32> to vector<24x128xbf16>
    %c0_9 = arith.constant 0 : index
    %c0_10 = arith.constant 0 : index
    %27 = vector.load %arg5[%c0_9, %c0_10] : memref<128x384xbf16, #tpu.memory_space<vmem>>, vector<128x384xbf16>
    %cst_11 = arith.constant dense<0.000000e+00> : vector<24x384xf32>
    %28 = tpu.matmul %26, %27, %cst_11 {dimension_numbers = #tpu.dot_dimension_numbers<[1], [0], [0], [1], [0, 0, 1, 1], [], []>} : vector<24x128xbf16>, vector<128x384xbf16>, vector<24x384xf32> -> vector<24x384xf32>
    %c0_12 = arith.constant 0 : index
    %c0_13 = arith.constant 0 : index
    %29 = vector.load %arg6[%c0_12, %c0_13] : memref<1x384xf32, #tpu.memory_space<vmem>>, vector<1x384xf32>
    %30 = vector.broadcast %29 : vector<1x384xf32> to vector<24x384xf32>
    %31 = arith.addf %28, %30 : vector<24x384xf32>
    %32 = arith.truncf %31 : vector<24x384xf32> to vector<24x384xbf16>
    %c0_14 = arith.constant 0 : index
    %c0_15 = arith.constant 0 : index
    %33 = vector.load %arg7[%c0_14, %c0_15] : memref<24x384xbf16, #tpu.memory_space<vmem>>, vector<24x384xbf16>
    tpu.vector_store %arg7[%c0_14, %c0_15], %32 {strides = array<i32>} : memref<24x384xbf16, #tpu.memory_space<vmem>>, vector<24x384xbf16>,
    return
  }
  func.func @transform_0(%arg0: i32, %arg1: i32) -> (i32, i32) {
    %c0_i32 = arith.constant 0 : i32
    %c0_i32_0 = arith.constant 0 : i32
    return %arg0, %c0_i32 : i32, i32
  }
  func.func @transform_1(%arg0: i32, %arg1: i32) -> (i32, i32) {
    %c0_i32 = arith.constant 0 : i32
    %c0_i32_0 = arith.constant 0 : i32
    %c0_i32_1 = arith.constant 0 : i32
    return %c0_i32, %c0_i32_0 : i32, i32
  }
  func.func @transform_2(%arg0: i32, %arg1: i32) -> (i32, i32) {
    %c0_i32 = arith.constant 0 : i32
    %c0_i32_0 = arith.constant 0 : i32
    %c0_i32_1 = arith.constant 0 : i32
    return %c0_i32, %c0_i32_0 : i32, i32
  }
  func.func @transform_3(%arg0: i32, %arg1: i32) -> (i32, i32) {
    %c0_i32 = arith.constant 0 : i32
    %c0_i32_0 = arith.constant 0 : i32
    return %c0_i32, %arg1 : i32, i32
  }
  func.func @transform_4(%arg0: i32, %arg1: i32) -> (i32, i32) {
    %c0_i32 = arith.constant 0 : i32
    %c0_i32_0 = arith.constant 0 : i32
    return %c0_i32, %arg1 : i32, i32
  }
  func.func @transform_5(%arg0: i32, %arg1: i32) -> (i32, i32) {
    %c0_i32 = arith.constant 0 : i32
    return %arg0, %arg1 : i32, i32
  }
}

module attributes {stable_mosaic.version = 11 : i64} {
  func.func @_mha_kernel(%arg0: i32, %arg1: i32, %arg2: memref<1x10x128xbf16, #tpu.memory_space<vmem>>, %arg3: memref<1x10x128xbf16, #tpu.memory_space<vmem>>, %arg4: memref<1x10x128xbf16, #tpu.memory_space<vmem>>, %arg5: memref<1x10x128xbf16, #tpu.memory_space<vmem>>) attributes {dimension_semantics = [#tpu.dimension_semantics<parallel>, #tpu.dimension_semantics<parallel>], iteration_bounds = array<i64: 2, 1>, scalar_prefetch = 0 : i64, scratch_operands = 0 : i64, tpu.core_type = #tpu.core_type<tc>, window_params = [{transform_indices = @transform_0, window_bounds = array<i64: 1, 10, 128>}, {transform_indices = @transform_1, window_bounds = array<i64: 1, 10, 128>}, {transform_indices = @transform_2, window_bounds = array<i64: 1, 10, 128>}, {transform_indices = @transform_3, window_bounds = array<i64: 1, 10, 128>}]} {
    %c0 = arith.constant 0 : index
    %c0_0 = arith.constant 0 : index
    %c0_1 = arith.constant 0 : index
    %0 = vector.load %arg2[%c0, %c0_0, %c0_1] : memref<1x10x128xbf16, #tpu.memory_space<vmem>>, vector<1x10x128xbf16>
    %1 = vector.shape_cast %0 : vector<1x10x128xbf16> to vector<10x128xbf16>
    %2 = arith.extf %1 : vector<10x128xbf16> to vector<10x128xf32>
    %cst = arith.constant 1.250000e-01 : f32
    %3 = vector.broadcast %cst : f32 to vector<10x128xf32>
    %4 = arith.mulf %2, %3 : vector<10x128xf32>
    %5 = arith.truncf %4 : vector<10x128xf32> to vector<10x128xbf16>
    %c0_2 = arith.constant 0 : index
    %c0_3 = arith.constant 0 : index
    %c0_4 = arith.constant 0 : index
    %6 = vector.load %arg3[%c0_2, %c0_3, %c0_4] : memref<1x10x128xbf16, #tpu.memory_space<vmem>>, vector<1x10x128xbf16>
    %7 = vector.shape_cast %6 : vector<1x10x128xbf16> to vector<10x128xbf16>
    %c0_5 = arith.constant 0 : index
    %c0_6 = arith.constant 0 : index
    %c0_7 = arith.constant 0 : index
    %8 = vector.load %arg4[%c0_5, %c0_6, %c0_7] : memref<1x10x128xbf16, #tpu.memory_space<vmem>>, vector<1x10x128xbf16>
    %9 = vector.shape_cast %8 : vector<1x10x128xbf16> to vector<10x128xbf16>
    %10 = vector.extract_strided_slice %5 {offsets = [0, 0], sizes = [10, 64], strides = [1, 1]} : vector<10x128xbf16> to vector<10x64xbf16>
    %11 = vector.extract_strided_slice %7 {offsets = [0, 0], sizes = [10, 64], strides = [1, 1]} : vector<10x128xbf16> to vector<10x64xbf16>
    %12 = vector.extract_strided_slice %9 {offsets = [0, 0], sizes = [10, 64], strides = [1, 1]} : vector<10x128xbf16> to vector<10x64xbf16>
    %cst_8 = arith.constant dense<0.000000e+00> : vector<10x10xf32>
    %13 = tpu.matmul %10, %11, %cst_8 {dimension_numbers = #tpu.dot_dimension_numbers<[1], [1], [0], [0], [0, 0, 1, 0], [], []>} : vector<10x64xbf16>, vector<10x64xbf16>, vector<10x10xf32> -> vector<10x10xf32>
    %cst_9 = arith.constant dense<0xFF800000> : vector<10xf32>
    %14 = vector.multi_reduction <maximumf>, %13, %cst_9 [1] : vector<10x10xf32> to vector<10xf32>
    %15 = vector.shape_cast %14 : vector<10xf32> to vector<10x1xf32>
    %16 = vector.broadcast %15 : vector<10x1xf32> to vector<10x10xf32>
    %17 = arith.subf %13, %16 : vector<10x10xf32>
    %18 = math.exp %17 : vector<10x10xf32>
    %cst_10 = arith.constant dense<0.000000e+00> : vector<10xf32>
    %19 = vector.multi_reduction <add>, %18, %cst_10 [1] : vector<10x10xf32> to vector<10xf32>
    %20 = vector.shape_cast %19 : vector<10xf32> to vector<10x1xf32>
    %21 = tpu.reciprocal %20 {approx = true} : vector<10x1xf32> -> vector<10x1xf32>
    %22 = vector.broadcast %21 : vector<10x1xf32> to vector<10x10xf32>
    %23 = arith.mulf %18, %22 : vector<10x10xf32>
    %24 = arith.truncf %23 : vector<10x10xf32> to vector<10x10xbf16>
    %cst_11 = arith.constant dense<0.000000e+00> : vector<10x64xf32>
    %25 = tpu.matmul %24, %12, %cst_11 {dimension_numbers = #tpu.dot_dimension_numbers<[1], [0], [0], [1], [0, 0, 1, 1], [], []>} : vector<10x10xbf16>, vector<10x64xbf16>, vector<10x64xf32> -> vector<10x64xf32>
    %26 = vector.extract_strided_slice %5 {offsets = [0, 64], sizes = [10, 64], strides = [1, 1]} : vector<10x128xbf16> to vector<10x64xbf16>
    %27 = vector.extract_strided_slice %7 {offsets = [0, 64], sizes = [10, 64], strides = [1, 1]} : vector<10x128xbf16> to vector<10x64xbf16>
    %28 = vector.extract_strided_slice %9 {offsets = [0, 64], sizes = [10, 64], strides = [1, 1]} : vector<10x128xbf16> to vector<10x64xbf16>
    %cst_12 = arith.constant dense<0.000000e+00> : vector<10x10xf32>
    %29 = tpu.matmul %26, %27, %cst_12 {dimension_numbers = #tpu.dot_dimension_numbers<[1], [1], [0], [0], [0, 0, 1, 0], [], []>} : vector<10x64xbf16>, vector<10x64xbf16>, vector<10x10xf32> -> vector<10x10xf32>
    %cst_13 = arith.constant dense<0xFF800000> : vector<10xf32>
    %30 = vector.multi_reduction <maximumf>, %29, %cst_13 [1] : vector<10x10xf32> to vector<10xf32>
    %31 = vector.shape_cast %30 : vector<10xf32> to vector<10x1xf32>
    %32 = vector.broadcast %31 : vector<10x1xf32> to vector<10x10xf32>
    %33 = arith.subf %29, %32 : vector<10x10xf32>
    %34 = math.exp %33 : vector<10x10xf32>
    %cst_14 = arith.constant dense<0.000000e+00> : vector<10xf32>
    %35 = vector.multi_reduction <add>, %34, %cst_14 [1] : vector<10x10xf32> to vector<10xf32>
    %36 = vector.shape_cast %35 : vector<10xf32> to vector<10x1xf32>
    %37 = tpu.reciprocal %36 {approx = true} : vector<10x1xf32> -> vector<10x1xf32>
    %38 = vector.broadcast %37 : vector<10x1xf32> to vector<10x10xf32>
    %39 = arith.mulf %34, %38 : vector<10x10xf32>
    %40 = arith.truncf %39 : vector<10x10xf32> to vector<10x10xbf16>
    %cst_15 = arith.constant dense<0.000000e+00> : vector<10x64xf32>
    %41 = tpu.matmul %40, %28, %cst_15 {dimension_numbers = #tpu.dot_dimension_numbers<[1], [0], [0], [1], [0, 0, 1, 1], [], []>} : vector<10x10xbf16>, vector<10x64xbf16>, vector<10x64xf32> -> vector<10x64xf32>
    %42 = tpu.concatenate %25, %41 in 1 : vector<10x64xf32>, vector<10x64xf32> -> vector<10x128xf32>
    %43 = arith.truncf %42 : vector<10x128xf32> to vector<10x128xbf16>
    %c0_16 = arith.constant 0 : index
    %c0_17 = arith.constant 0 : index
    %c0_18 = arith.constant 0 : index
    %44 = vector.load %arg5[%c0_16, %c0_17, %c0_18] : memref<1x10x128xbf16, #tpu.memory_space<vmem>>, vector<1x10x128xbf16>
    %45 = vector.shape_cast %44 : vector<1x10x128xbf16> to vector<10x128xbf16>
    %46 = vector.shape_cast %43 : vector<10x128xbf16> to vector<1x10x128xbf16>
    tpu.vector_store %arg5[%c0_16, %c0_17, %c0_18], %46 {strides = array<i32>} : memref<1x10x128xbf16, #tpu.memory_space<vmem>>, vector<1x10x128xbf16>,
    return
  }
  func.func @transform_0(%arg0: i32, %arg1: i32) -> (i32, i32, i32) {
    %c0_i32 = arith.constant 0 : i32
    %c0_i32_0 = arith.constant 0 : i32
    return %arg0, %c0_i32, %arg1 : i32, i32, i32
  }
  func.func @transform_1(%arg0: i32, %arg1: i32) -> (i32, i32, i32) {
    %c1_i32 = arith.constant 1 : i32
    %0 = arith.addi %arg1, %c1_i32 : i32
    %c0_i32 = arith.constant 0 : i32
    %c0_i32_0 = arith.constant 0 : i32
    return %arg0, %c0_i32, %0 : i32, i32, i32
  }
  func.func @transform_2(%arg0: i32, %arg1: i32) -> (i32, i32, i32) {
    %c2_i32 = arith.constant 2 : i32
    %0 = arith.addi %arg1, %c2_i32 : i32
    %c0_i32 = arith.constant 0 : i32
    %c0_i32_0 = arith.constant 0 : i32
    return %arg0, %c0_i32, %0 : i32, i32, i32
  }
  func.func @transform_3(%arg0: i32, %arg1: i32) -> (i32, i32, i32) {
    %c0_i32 = arith.constant 0 : i32
    %c0_i32_0 = arith.constant 0 : i32
    return %arg0, %c0_i32, %arg1 : i32, i32, i32
  }
}

module attributes {stable_mosaic.version = 11 : i64} {
  func.func @_matmul_kernel(%arg0: i32, %arg1: i32, %arg2: i32, %arg3: memref<24x128xbf16, #tpu.memory_space<vmem>>, %arg4: memref<128x128xbf16, #tpu.memory_space<vmem>>, %arg5: memref<1x128xf32, #tpu.memory_space<vmem>>, %arg6: memref<24x128xbf16, #tpu.memory_space<vmem>>, %arg7: memref<24x128xbf16, #tpu.memory_space<vmem>>, %arg8: memref<24x128xf32, #tpu.memory_space<vmem>>) attributes {dimension_semantics = [#tpu.dimension_semantics<parallel>, #tpu.dimension_semantics<parallel>, #tpu.dimension_semantics<arbitrary>], iteration_bounds = array<i64: 1, 1, 1>, scalar_prefetch = 0 : i64, scratch_operands = 1 : i64, tpu.core_type = #tpu.core_type<tc>, window_params = [{transform_indices = @transform_0, window_bounds = array<i64: 24, 128>}, {transform_indices = @transform_1, window_bounds = array<i64: 128, 128>}, {transform_indices = @transform_2, window_bounds = array<i64: 1, 128>}, {transform_indices = @transform_3, window_bounds = array<i64: 24, 128>}, {transform_indices = @transform_4, window_bounds = array<i64: 24, 128>}]} {
    %c0_i32 = arith.constant 0 : i32
    %0 = arith.cmpi eq, %arg2, %c0_i32 : i32
    %1 = arith.extui %0 : i1 to i32
    %c0_i32_0 = arith.constant 0 : i32
    %2 = arith.cmpi ne, %1, %c0_i32_0 : i32
    scf.if %2 {
      %cst_10 = arith.constant 0.000000e+00 : f32
      %12 = vector.broadcast %cst_10 : f32 to vector<24x128xf32>
      %c0_11 = arith.constant 0 : index
      %c0_12 = arith.constant 0 : index
      %13 = vector.load %arg8[%c0_11, %c0_12] : memref<24x128xf32, #tpu.memory_space<vmem>>, vector<24x128xf32>
      tpu.vector_store %arg8[%c0_11, %c0_12], %12 {strides = array<i32>} : memref<24x128xf32, #tpu.memory_space<vmem>>, vector<24x128xf32>,
    } else {
    }
    %c0 = arith.constant 0 : index
    %c0_1 = arith.constant 0 : index
    %3 = vector.load %arg8[%c0, %c0_1] : memref<24x128xf32, #tpu.memory_space<vmem>>, vector<24x128xf32>
    %c0_2 = arith.constant 0 : index
    %c0_3 = arith.constant 0 : index
    %4 = vector.load %arg3[%c0_2, %c0_3] : memref<24x128xbf16, #tpu.memory_space<vmem>>, vector<24x128xbf16>
    %c0_4 = arith.constant 0 : index
    %c0_5 = arith.constant 0 : index
    %5 = vector.load %arg4[%c0_4, %c0_5] : memref<128x128xbf16, #tpu.memory_space<vmem>>, vector<128x128xbf16>
    %cst = arith.constant dense<0.000000e+00> : vector<24x128xf32>
    %6 = tpu.matmul %4, %5, %cst {dimension_numbers = #tpu.dot_dimension_numbers<[1], [0], [0], [1], [0, 0, 1, 1], [], []>} : vector<24x128xbf16>, vector<128x128xbf16>, vector<24x128xf32> -> vector<24x128xf32>
    %7 = arith.addf %3, %6 : vector<24x128xf32>
    %c0_6 = arith.constant 0 : index
    %c0_7 = arith.constant 0 : index
    %8 = vector.load %arg8[%c0_6, %c0_7] : memref<24x128xf32, #tpu.memory_space<vmem>>, vector<24x128xf32>
    tpu.vector_store %arg8[%c0_6, %c0_7], %7 {strides = array<i32>} : memref<24x128xf32, #tpu.memory_space<vmem>>, vector<24x128xf32>,
    %c0_i32_8 = arith.constant 0 : i32
    %9 = arith.cmpi eq, %arg2, %c0_i32_8 : i32
    %10 = arith.extui %9 : i1 to i32
    %c0_i32_9 = arith.constant 0 : i32
    %11 = arith.cmpi ne, %10, %c0_i32_9 : i32
    scf.if %11 {
      %c0_10 = arith.constant 0 : index
      %c0_11 = arith.constant 0 : index
      %12 = vector.load %arg8[%c0_10, %c0_11] : memref<24x128xf32, #tpu.memory_space<vmem>>, vector<24x128xf32>
      %c0_12 = arith.constant 0 : index
      %c0_13 = arith.constant 0 : index
      %13 = vector.load %arg5[%c0_12, %c0_13] : memref<1x128xf32, #tpu.memory_space<vmem>>, vector<1x128xf32>
      %14 = vector.broadcast %13 : vector<1x128xf32> to vector<24x128xf32>
      %15 = arith.addf %12, %14 : vector<24x128xf32>
      %c0_14 = arith.constant 0 : index
      %c0_15 = arith.constant 0 : index
      %16 = vector.load %arg6[%c0_14, %c0_15] : memref<24x128xbf16, #tpu.memory_space<vmem>>, vector<24x128xbf16>
      %17 = arith.extf %16 : vector<24x128xbf16> to vector<24x128xf32>
      %18 = arith.addf %15, %17 : vector<24x128xf32>
      %19 = arith.truncf %18 : vector<24x128xf32> to vector<24x128xbf16>
      %c0_16 = arith.constant 0 : index
      %c0_17 = arith.constant 0 : index
      %20 = vector.load %arg7[%c0_16, %c0_17] : memref<24x128xbf16, #tpu.memory_space<vmem>>, vector<24x128xbf16>
      tpu.vector_store %arg7[%c0_16, %c0_17], %19 {strides = array<i32>} : memref<24x128xbf16, #tpu.memory_space<vmem>>, vector<24x128xbf16>,
    } else {
    }
    return
  }
  func.func @transform_0(%arg0: i32, %arg1: i32, %arg2: i32) -> (i32, i32) {
    %c0_i32 = arith.constant 0 : i32
    return %arg0, %arg2 : i32, i32
  }
  func.func @transform_1(%arg0: i32, %arg1: i32, %arg2: i32) -> (i32, i32) {
    %c0_i32 = arith.constant 0 : i32
    return %arg2, %arg1 : i32, i32
  }
  func.func @transform_2(%arg0: i32, %arg1: i32, %arg2: i32) -> (i32, i32) {
    %c0_i32 = arith.constant 0 : i32
    %c0_i32_0 = arith.constant 0 : i32
    return %c0_i32, %arg1 : i32, i32
  }
  func.func @transform_3(%arg0: i32, %arg1: i32, %arg2: i32) -> (i32, i32) {
    %c0_i32 = arith.constant 0 : i32
    return %arg0, %arg1 : i32, i32
  }
  func.func @transform_4(%arg0: i32, %arg1: i32, %arg2: i32) -> (i32, i32) {
    %c0_i32 = arith.constant 0 : i32
    return %arg0, %arg1 : i32, i32
  }
}

module attributes {stable_mosaic.version = 11 : i64} {
  func.func @_ln_matmul_kernel(%arg0: i32, %arg1: i32, %arg2: memref<24x128xbf16, #tpu.memory_space<vmem>>, %arg3: memref<1x128xf32, #tpu.memory_space<vmem>>, %arg4: memref<1x128xf32, #tpu.memory_space<vmem>>, %arg5: memref<128x512xbf16, #tpu.memory_space<vmem>>, %arg6: memref<1x512xf32, #tpu.memory_space<vmem>>, %arg7: memref<24x512xbf16, #tpu.memory_space<vmem>>) attributes {dimension_semantics = [#tpu.dimension_semantics<parallel>, #tpu.dimension_semantics<parallel>], iteration_bounds = array<i64: 1, 1>, scalar_prefetch = 0 : i64, scratch_operands = 0 : i64, tpu.core_type = #tpu.core_type<tc>, window_params = [{transform_indices = @transform_0, window_bounds = array<i64: 24, 128>}, {pipeline_mode = #tpu.pipeline_mode<synchronous>, transform_indices = @transform_1, window_bounds = array<i64: 1, 128>}, {pipeline_mode = #tpu.pipeline_mode<synchronous>, transform_indices = @transform_2, window_bounds = array<i64: 1, 128>}, {transform_indices = @transform_3, window_bounds = array<i64: 128, 512>}, {transform_indices = @transform_4, window_bounds = array<i64: 1, 512>}, {transform_indices = @transform_5, window_bounds = array<i64: 24, 512>}]} {
    %c0 = arith.constant 0 : index
    %c0_0 = arith.constant 0 : index
    %0 = vector.load %arg2[%c0, %c0_0] : memref<24x128xbf16, #tpu.memory_space<vmem>>, vector<24x128xbf16>
    %1 = arith.extf %0 : vector<24x128xbf16> to vector<24x128xf32>
    %cst = arith.constant dense<0.000000e+00> : vector<24xf32>
    %2 = vector.multi_reduction <add>, %1, %cst [1] : vector<24x128xf32> to vector<24xf32>
    %3 = vector.shape_cast %2 : vector<24xf32> to vector<24x1xf32>
    %cst_1 = arith.constant 1.280000e+02 : f32
    %4 = vector.broadcast %cst_1 : f32 to vector<24x1xf32>
    %5 = arith.divf %3, %4 : vector<24x1xf32>
    %6 = vector.broadcast %5 : vector<24x1xf32> to vector<24x128xf32>
    %7 = arith.subf %1, %6 : vector<24x128xf32>
    %8 = arith.mulf %7, %7 : vector<24x128xf32>
    %cst_2 = arith.constant dense<0.000000e+00> : vector<24xf32>
    %9 = vector.multi_reduction <add>, %8, %cst_2 [1] : vector<24x128xf32> to vector<24xf32>
    %10 = vector.shape_cast %9 : vector<24xf32> to vector<24x1xf32>
    %cst_3 = arith.constant 1.280000e+02 : f32
    %11 = vector.broadcast %cst_3 : f32 to vector<24x1xf32>
    %12 = arith.divf %10, %11 : vector<24x1xf32>
    %13 = vector.broadcast %5 : vector<24x1xf32> to vector<24x128xf32>
    %14 = arith.subf %1, %13 : vector<24x128xf32>
    %cst_4 = arith.constant 9.99999974E-6 : f32
    %15 = vector.broadcast %cst_4 : f32 to vector<24x1xf32>
    %16 = arith.addf %12, %15 : vector<24x1xf32>
    %17 = math.rsqrt %16 : vector<24x1xf32>
    %18 = vector.broadcast %17 : vector<24x1xf32> to vector<24x128xf32>
    %19 = arith.mulf %14, %18 : vector<24x128xf32>
    %c0_5 = arith.constant 0 : index
    %c0_6 = arith.constant 0 : index
    %20 = vector.load %arg3[%c0_5, %c0_6] : memref<1x128xf32, #tpu.memory_space<vmem>>, vector<1x128xf32>
    %21 = vector.broadcast %20 : vector<1x128xf32> to vector<24x128xf32>
    %22 = arith.mulf %19, %21 : vector<24x128xf32>
    %c0_7 = arith.constant 0 : index
    %c0_8 = arith.constant 0 : index
    %23 = vector.load %arg4[%c0_7, %c0_8] : memref<1x128xf32, #tpu.memory_space<vmem>>, vector<1x128xf32>
    %24 = vector.broadcast %23 : vector<1x128xf32> to vector<24x128xf32>
    %25 = arith.addf %22, %24 : vector<24x128xf32>
    %26 = arith.truncf %25 : vector<24x128xf32> to vector<24x128xbf16>
    %c0_9 = arith.constant 0 : index
    %c0_10 = arith.constant 0 : index
    %27 = vector.load %arg5[%c0_9, %c0_10] : memref<128x512xbf16, #tpu.memory_space<vmem>>, vector<128x512xbf16>
    %cst_11 = arith.constant dense<0.000000e+00> : vector<24x512xf32>
    %28 = tpu.matmul %26, %27, %cst_11 {dimension_numbers = #tpu.dot_dimension_numbers<[1], [0], [0], [1], [0, 0, 1, 1], [], []>} : vector<24x128xbf16>, vector<128x512xbf16>, vector<24x512xf32> -> vector<24x512xf32>
    %c0_12 = arith.constant 0 : index
    %c0_13 = arith.constant 0 : index
    %29 = vector.load %arg6[%c0_12, %c0_13] : memref<1x512xf32, #tpu.memory_space<vmem>>, vector<1x512xf32>
    %30 = vector.broadcast %29 : vector<1x512xf32> to vector<24x512xf32>
    %31 = arith.addf %28, %30 : vector<24x512xf32>
    %cst_14 = arith.constant 1.702000e+00 : f32
    %32 = vector.broadcast %cst_14 : f32 to vector<24x512xf32>
    %33 = arith.mulf %32, %31 : vector<24x512xf32>
    %34 = arith.negf %33 : vector<24x512xf32>
    %35 = math.exp %34 : vector<24x512xf32>
    %cst_15 = arith.constant 1.000000e+00 : f32
    %36 = vector.broadcast %cst_15 : f32 to vector<24x512xf32>
    %37 = arith.addf %36, %35 : vector<24x512xf32>
    %38 = arith.divf %36, %37 : vector<24x512xf32>
    %39 = arith.mulf %31, %38 : vector<24x512xf32>
    %40 = arith.truncf %39 : vector<24x512xf32> to vector<24x512xbf16>
    %c0_16 = arith.constant 0 : index
    %c0_17 = arith.constant 0 : index
    %41 = vector.load %arg7[%c0_16, %c0_17] : memref<24x512xbf16, #tpu.memory_space<vmem>>, vector<24x512xbf16>
    tpu.vector_store %arg7[%c0_16, %c0_17], %40 {strides = array<i32>} : memref<24x512xbf16, #tpu.memory_space<vmem>>, vector<24x512xbf16>,
    return
  }
  func.func @transform_0(%arg0: i32, %arg1: i32) -> (i32, i32) {
    %c0_i32 = arith.constant 0 : i32
    %c0_i32_0 = arith.constant 0 : i32
    return %arg0, %c0_i32 : i32, i32
  }
  func.func @transform_1(%arg0: i32, %arg1: i32) -> (i32, i32) {
    %c0_i32 = arith.constant 0 : i32
    %c0_i32_0 = arith.constant 0 : i32
    %c0_i32_1 = arith.constant 0 : i32
    return %c0_i32, %c0_i32_0 : i32, i32
  }
  func.func @transform_2(%arg0: i32, %arg1: i32) -> (i32, i32) {
    %c0_i32 = arith.constant 0 : i32
    %c0_i32_0 = arith.constant 0 : i32
    %c0_i32_1 = arith.constant 0 : i32
    return %c0_i32, %c0_i32_0 : i32, i32
  }
  func.func @transform_3(%arg0: i32, %arg1: i32) -> (i32, i32) {
    %c0_i32 = arith.constant 0 : i32
    %c0_i32_0 = arith.constant 0 : i32
    return %c0_i32, %arg1 : i32, i32
  }
  func.func @transform_4(%arg0: i32, %arg1: i32) -> (i32, i32) {
    %c0_i32 = arith.constant 0 : i32
    %c0_i32_0 = arith.constant 0 : i32
    return %c0_i32, %arg1 : i32, i32
  }
  func.func @transform_5(%arg0: i32, %arg1: i32) -> (i32, i32) {
    %c0_i32 = arith.constant 0 : i32
    return %arg0, %arg1 : i32, i32
  }
}

module attributes {stable_mosaic.version = 11 : i64} {
  func.func @_matmul_kernel(%arg0: i32, %arg1: i32, %arg2: i32, %arg3: memref<24x512xbf16, #tpu.memory_space<vmem>>, %arg4: memref<512x128xbf16, #tpu.memory_space<vmem>>, %arg5: memref<1x128xf32, #tpu.memory_space<vmem>>, %arg6: memref<24x128xbf16, #tpu.memory_space<vmem>>, %arg7: memref<24x128xbf16, #tpu.memory_space<vmem>>, %arg8: memref<24x128xf32, #tpu.memory_space<vmem>>) attributes {dimension_semantics = [#tpu.dimension_semantics<parallel>, #tpu.dimension_semantics<parallel>, #tpu.dimension_semantics<arbitrary>], iteration_bounds = array<i64: 1, 1, 1>, scalar_prefetch = 0 : i64, scratch_operands = 1 : i64, tpu.core_type = #tpu.core_type<tc>, window_params = [{transform_indices = @transform_0, window_bounds = array<i64: 24, 512>}, {transform_indices = @transform_1, window_bounds = array<i64: 512, 128>}, {transform_indices = @transform_2, window_bounds = array<i64: 1, 128>}, {transform_indices = @transform_3, window_bounds = array<i64: 24, 128>}, {transform_indices = @transform_4, window_bounds = array<i64: 24, 128>}]} {
    %c0_i32 = arith.constant 0 : i32
    %0 = arith.cmpi eq, %arg2, %c0_i32 : i32
    %1 = arith.extui %0 : i1 to i32
    %c0_i32_0 = arith.constant 0 : i32
    %2 = arith.cmpi ne, %1, %c0_i32_0 : i32
    scf.if %2 {
      %cst_10 = arith.constant 0.000000e+00 : f32
      %12 = vector.broadcast %cst_10 : f32 to vector<24x128xf32>
      %c0_11 = arith.constant 0 : index
      %c0_12 = arith.constant 0 : index
      %13 = vector.load %arg8[%c0_11, %c0_12] : memref<24x128xf32, #tpu.memory_space<vmem>>, vector<24x128xf32>
      tpu.vector_store %arg8[%c0_11, %c0_12], %12 {strides = array<i32>} : memref<24x128xf32, #tpu.memory_space<vmem>>, vector<24x128xf32>,
    } else {
    }
    %c0 = arith.constant 0 : index
    %c0_1 = arith.constant 0 : index
    %3 = vector.load %arg8[%c0, %c0_1] : memref<24x128xf32, #tpu.memory_space<vmem>>, vector<24x128xf32>
    %c0_2 = arith.constant 0 : index
    %c0_3 = arith.constant 0 : index
    %4 = vector.load %arg3[%c0_2, %c0_3] : memref<24x512xbf16, #tpu.memory_space<vmem>>, vector<24x512xbf16>
    %c0_4 = arith.constant 0 : index
    %c0_5 = arith.constant 0 : index
    %5 = vector.load %arg4[%c0_4, %c0_5] : memref<512x128xbf16, #tpu.memory_space<vmem>>, vector<512x128xbf16>
    %cst = arith.constant dense<0.000000e+00> : vector<24x128xf32>
    %6 = tpu.matmul %4, %5, %cst {dimension_numbers = #tpu.dot_dimension_numbers<[1], [0], [0], [1], [0, 0, 1, 1], [], []>} : vector<24x512xbf16>, vector<512x128xbf16>, vector<24x128xf32> -> vector<24x128xf32>
    %7 = arith.addf %3, %6 : vector<24x128xf32>
    %c0_6 = arith.constant 0 : index
    %c0_7 = arith.constant 0 : index
    %8 = vector.load %arg8[%c0_6, %c0_7] : memref<24x128xf32, #tpu.memory_space<vmem>>, vector<24x128xf32>
    tpu.vector_store %arg8[%c0_6, %c0_7], %7 {strides = array<i32>} : memref<24x128xf32, #tpu.memory_space<vmem>>, vector<24x128xf32>,
    %c0_i32_8 = arith.constant 0 : i32
    %9 = arith.cmpi eq, %arg2, %c0_i32_8 : i32
    %10 = arith.extui %9 : i1 to i32
    %c0_i32_9 = arith.constant 0 : i32
    %11 = arith.cmpi ne, %10, %c0_i32_9 : i32
    scf.if %11 {
      %c0_10 = arith.constant 0 : index
      %c0_11 = arith.constant 0 : index
      %12 = vector.load %arg8[%c0_10, %c0_11] : memref<24x128xf32, #tpu.memory_space<vmem>>, vector<24x128xf32>
      %c0_12 = arith.constant 0 : index
      %c0_13 = arith.constant 0 : index
      %13 = vector.load %arg5[%c0_12, %c0_13] : memref<1x128xf32, #tpu.memory_space<vmem>>, vector<1x128xf32>
      %14 = vector.broadcast %13 : vector<1x128xf32> to vector<24x128xf32>
      %15 = arith.addf %12, %14 : vector<24x128xf32>
      %c0_14 = arith.constant 0 : index
      %c0_15 = arith.constant 0 : index
      %16 = vector.load %arg6[%c0_14, %c0_15] : memref<24x128xbf16, #tpu.memory_space<vmem>>, vector<24x128xbf16>
      %17 = arith.extf %16 : vector<24x128xbf16> to vector<24x128xf32>
      %18 = arith.addf %15, %17 : vector<24x128xf32>
      %19 = arith.truncf %18 : vector<24x128xf32> to vector<24x128xbf16>
      %c0_16 = arith.constant 0 : index
      %c0_17 = arith.constant 0 : index
      %20 = vector.load %arg7[%c0_16, %c0_17] : memref<24x128xbf16, #tpu.memory_space<vmem>>, vector<24x128xbf16>
      tpu.vector_store %arg7[%c0_16, %c0_17], %19 {strides = array<i32>} : memref<24x128xbf16, #tpu.memory_space<vmem>>, vector<24x128xbf16>,
    } else {
    }
    return
  }
  func.func @transform_0(%arg0: i32, %arg1: i32, %arg2: i32) -> (i32, i32) {
    %c0_i32 = arith.constant 0 : i32
    return %arg0, %arg2 : i32, i32
  }
  func.func @transform_1(%arg0: i32, %arg1: i32, %arg2: i32) -> (i32, i32) {
    %c0_i32 = arith.constant 0 : i32
    return %arg2, %arg1 : i32, i32
  }
  func.func @transform_2(%arg0: i32, %arg1: i32, %arg2: i32) -> (i32, i32) {
    %c0_i32 = arith.constant 0 : i32
    %c0_i32_0 = arith.constant 0 : i32
    return %c0_i32, %arg1 : i32, i32
  }
  func.func @transform_3(%arg0: i32, %arg1: i32, %arg2: i32) -> (i32, i32) {
    %c0_i32 = arith.constant 0 : i32
    return %arg0, %arg1 : i32, i32
  }
  func.func @transform_4(%arg0: i32, %arg1: i32, %arg2: i32) -> (i32, i32) {
    %c0_i32 = arith.constant 0 : i32
    return %arg0, %arg1 : i32, i32
  }
}

</mosaic_0001>

<bundles_post_ra>
// kernel: clip_base_patch16_224_1P_forward.12
= control target key start
LH: loop header
LB: loop body
LE: loop exit
PB: predicated region body
PF: predicated region fallthrough
CT: control target
= control target key end

     0   :  { %s977_s12 = smov 0   ;;  %s979_s13 = smov 0   ;;  %s1081_s0 = inlined_call_operand.vmem [shape: bf16[16,768], index: 0, kind: input, shape index: {}]   ;;  %s1082_s1 = inlined_call_operand.vmem [shape: bf16[768,128], index: 1, kind: input, shape index: {}]   ;;  %s1083_s2 = inlined_call_operand.vmem [shape: f32[1,128], index: 2, kind: input, shape index: {}]   ;;  %s1084_s3 = inlined_call_operand.vmem [shape: bf16[16,128], index: 3, kind: output, shape index: {}]  }
   0x1   :  { %s981_s14 = smov 0   ;;  %s983_s15 = smov 0  }
   0x2   :  { %s985_s16 = smov 0  }
   0x3 LB: > { %s25_s17 = sadd.s32 1, %s948_s15  ;;  %p48_p1 = scmp.ne.s32.totalorder %s940_s13, %s936_s12  ;;  %s952_s16 = sphi %s985_s16, %s13_s16   ;;  %s948_s15 = sphi %s983_s15, %s1088_s15   ;;  %s944_s14 = sphi %s981_s14, %s1087_s14   ;;  %s940_s13 = sphi %s979_s13, %s1086_s13   ;;  %s936_s12 = sphi %s977_s12, %s1085_s12  }
   0x4   : > { %p26_p0 = scmp.ge.s32.totalorder %s25_s17, 2  ;;  %p49_p2 = scmp.eq.s32.totalorder %s952_s16, 0 }
   0x5   : > { %s41_s19 = sadd.s32 1, %s940_s13  ;;  %p738_p5 = scmp.ge.s32.totalorder %s952_s16, 2 }
   0x6   : > { %s1090_s17 = smov (%p26_p0, %s25_s17), 0  ;;  %p50_p3 = por %p49_p2, %p48_p1 }
   0x7   : > { %s37_s18 = ssub.s32 %s948_s15, %s1090_s17  ;;  %162 = sbr.rel (%p738_p5) target bundleno = 21 (0x15), region = 20 }
   0x8   : > { %p39_p4 = scmp.eq.s32.totalorder %s37_s18, 0 }
   0xa   : > { %s1012_s20 = scalar_select %p39_p4, %s940_s13, %s41_s19  }
   0xe   : > { %165 = sbr.rel (!%p50_p3) target bundleno = 21 (0x15), region = 24  ;;  %s167_s21 = sand.u32 (%p50_p3), 1, %s940_s13  }
   0xf   : > { %s782_s22 = smul.u32 (%p50_p3), 12, %s948_s15 }
  0x10   : > { %s841_s23 = smul.u32 (%p50_p3), 24, %s167_s21 }
  0x11   : > { %s175_s26 = scalar_lea.vmem (%p50_p3), %s1081_s0, %s782_s22 }
  0x12   : > { %v190_v0 = vld [vmem:[%s175_s26] sm:$0xff] (%p50_p3)  ;;  %v192_v1 = vld [vmem:[%s175_s26 + $0x18] sm:$0xff] (%p50_p3)  ;;  %v740_v2 = vld [vmem:[%s175_s26 + $0x8] sm:$0xf] (%p50_p3)  ;;  %s169_s27 = scalar_lea.vmem (%p50_p3), [#allocation3], %s841_s23 }
  0x13   : > { %191 = vst [vmem:[%s169_s27] sm:$0xff] (%p50_p3), %v190_v0  ;;  %193 = vst [vmem:[%s169_s27 + $0xc] sm:$0xff] (%p50_p3), %v192_v1  ;;  %v742_v3 = vld [vmem:[%s175_s26 + $0x20] sm:$0xf] (%p50_p3) }
  0x14   : > { %741 = vst [vmem:[%s169_s27 + $0x8] sm:$0xf] (%p50_p3), %v740_v2  ;;  %743 = vst [vmem:[%s169_s27 + $0x14] sm:$0xf] (%p50_p3), %v742_v3 }
  0x15 PF: > { %p744_p6 = scmp.ge.s32.totalorder %s952_s16, 1  ;;  %p221_p7 = scmp.lt.s32.totalorder %s952_s16, 3 }
  0x17   : > { %p222_p8 = pnand %p744_p6, %p221_p7 }
  0x18   : > { %s228_s28 = sand.u32 (!%p222_p8), 1, %s936_s12   ;;  %s267_s29 = smul.u32 (!%p222_p8), 48, %s944_s14 }
  0x19   : > { %225 = sbr.rel (%p222_p8) target bundleno = 306 (0x132), region = 54  ;;  %p746_p10 = scmp.ne.s32.totalorder (!%p222_p8), %s944_s14, 0 }
  0x1a   : > { %s842_s30 = smul.u32 (!%p222_p8), 24, %s228_s28  ;;  %p268_p9 = scmp.lt.s32.totalorder (!%p222_p8), %s267_s29, 95 }
  0x1c   : > { %s1029_s8 = scalar_lea.vmem (!%p222_p8), [#allocation3], %s842_s30 }
  0x20   : > { %s1092_s29 = smov (!%p268_p9, %s267_s29), 95  ;;  %292 = sbr.rel (%p746_p10) target bundleno = 39 (0x27), region = 62 }
  0x21   : > { %s745_s4 = sshll.u32 %s1092_s29, 2  ;;  %v954_v4 = vmov (!%p746_p10), 0.0  }
  0x22   : > { %s1027_s7 = scalar_lea.vmem %s1082_s1, %s745_s4  ;;  %293 = vst [vmem:[#allocation2] sm:$0xff] (!%p746_p10), %v954_v4  ;;  %294 = vst [vmem:[#allocation2 + $0x8] sm:$0xff] (!%p746_p10), %v954_v4 }
  0x27 PF: > { %v886_v5 = vld [vmem:[%s1027_s7 + $0x40] sm:$0xff]   ;;  %v955_v6 = vmov 0.0   ;;  %vm956_vm0 = vmmov 0   ;;  %v889_v9 = vld [vmem:[%s1027_s7 + $0x48] sm:$0xff]   ;;  %v892_v12 = vld [vmem:[%s1027_s7 + $0x50] sm:$0xff]   ;;  %p774_p11 = scmp.ne.s32.totalorder %s944_s14, 1 }
  0x28   : > { %821 = vmatprep.subr.bf16.mxu1 %v955_v6  ;;  %v887_v7 = vld [vmem:[%s1027_s7] sm:$0xff]   ;;  %790 = vmatprep.subr.bf16.mxu0 %v886_v5  ;;  %v890_v10 = vld [vmem:[%s1027_s7 + $0x8] sm:$0xff]   ;;  %v893_v13 = vld [vmem:[%s1027_s7 + $0x10] sm:$0xff]  }
  0x29   : > { %v888_v8 = vld [vmem:[%s1027_s7 + $0x80] sm:$0xff]   ;;  %837 = vmatprep.mubr.msk.bf16.mxu1 %vm956_vm0, %v955_v6  ;;  %791 = vmatpush3.bf16.msra.mxu0 %v887_v7  ;;  %v891_v11 = vld [vmem:[%s1027_s7 + $0x88] sm:$0xff]   ;;  %v894_v14 = vld [vmem:[%s1027_s7 + $0x90] sm:$0xff]  }
  0x2a   : > { %822 = vmatpush3.bf16.msra.mxu1 %v888_v8  ;;  %792 = vmatprep.subr.bf16.mxu0 %v889_v9  ;;  %v895_v15 = vld [vmem:[%s1027_s7 + $0x58] sm:$0xff]   ;;  %v898_v18 = vld [vmem:[%s1027_s7 + $0x60] sm:$0xff]   ;;  %v901_v21 = vld [vmem:[%s1027_s7 + $0x68] sm:$0xff]  }
  0x2b   : > { %823 = vmatprep.subr.bf16.mxu1 %v955_v6  ;;  %v896_v16 = vld [vmem:[%s1027_s7 + $0x18] sm:$0xff]   ;;  %v899_v19 = vld [vmem:[%s1027_s7 + $0x20] sm:$0xff]   ;;  %v902_v22 = vld [vmem:[%s1027_s7 + $0x28] sm:$0xff]  }
  0x2c   : > { %v897_v17 = vld [vmem:[%s1027_s7 + $0x98] sm:$0xff]   ;;  %v900_v20 = vld [vmem:[%s1027_s7 + $0xa0] sm:$0xff]   ;;  %v903_v23 = vld [vmem:[%s1027_s7 + $0xa8] sm:$0xff]  }
  0x2d   : > { %793 = vmatpush3.bf16.msra.mxu0 %v890_v10  ;;  %v904_v24 = vld [vmem:[%s1027_s7 + $0x70] sm:$0xff]   ;;  %v907_v27 = vld [vmem:[%s1027_s7 + $0x78] sm:$0xff]   ;;  %v295_v39 = vld [vmem:[#allocation2] sm:$0xff] }
  0x2e   : > { %824 = vmatpush3.bf16.msra.mxu1 %v891_v11  ;;  %794 = vmatprep.subr.bf16.mxu0 %v892_v12  ;;  %v905_v25 = vld [vmem:[%s1027_s7 + $0x30] sm:$0xff]   ;;  %v908_v29 = vld [vmem:[%s1027_s7 + $0x38] sm:$0xff]   ;;  %v296_v45 = vld [vmem:[#allocation2 + $0x8] sm:$0xff] }
  0x2f   : > { %825 = vmatprep.subr.bf16.mxu1 %v955_v6  ;;  %v906_v26 = vld [vmem:[%s1027_s7 + $0xb0] sm:$0xff]   ;;  %v909_v30 = vld [vmem:[%s1027_s7 + $0xb8] sm:$0xff]   ;;  %v775_v51 = vld [vmem:[%s1083_s2] ss:$0 sm:$0xff] (!%p774_p11) }
  0x30   : > { %v912_v28 = vld [vmem:[%s1029_s8 + $0x4] ss:$12 sps:$4 sm:$0xff]   ;;  %v910_v31 = vld [vmem:[%s1029_s8] ss:$12 sps:$4 sm:$0xff]   ;;  %v913_v32 = vld [vmem:[%s1029_s8 + $0x8] ss:$12 sps:$4 sm:$0xff]  }
  0x31   : > { %795 = vmatpush3.bf16.msra.mxu0 %v893_v13  ;;  %541 = vmatprep.mubr.bf16.mxu0 %v912_v28 }
  0x32   : > { %826 = vmatpush3.bf16.msra.mxu1 %v894_v14  ;;  %796 = vmatprep.subr.bf16.mxu0 %v895_v15 }
  0x33   : > { %827 = vmatprep.subr.bf16.mxu1 %v955_v6 }
  0x35   : > { %797 = vmatpush3.bf16.msra.mxu0 %v896_v16 }
  0x36   : > { %828 = vmatpush3.bf16.msra.mxu1 %v897_v17  ;;  %798 = vmatprep.subr.bf16.mxu0 %v898_v18 }
  0x37   : > { %829 = vmatprep.subr.bf16.mxu1 %v955_v6 }
  0x39   : > { %799 = vmatpush3.bf16.msra.mxu0 %v899_v19 }
  0x3a   : > { %830 = vmatpush3.bf16.msra.mxu1 %v900_v20  ;;  %800 = vmatprep.subr.bf16.mxu0 %v901_v21 }
  0x3b   : > { %831 = vmatprep.subr.bf16.mxu1 %v955_v6 }
  0x3d   : > { %801 = vmatpush3.bf16.msra.mxu0 %v902_v22 }
  0x3e   : > { %832 = vmatpush3.bf16.msra.mxu1 %v903_v23  ;;  %802 = vmatprep.subr.bf16.mxu0 %v904_v24 }
  0x3f   : > { %833 = vmatprep.subr.bf16.mxu1 %v955_v6 }
  0x41   : > { %803 = vmatpush3.bf16.msra.mxu0 %v905_v25 }
  0x42   : > { %834 = vmatpush3.bf16.msra.mxu1 %v906_v26  ;;  %804 = vmatprep.subr.bf16.mxu0 %v907_v27 }
  0x43   : > { %835 = vmatprep.subr.bf16.mxu1 %v955_v6 }
  0x45   : > { %805 = vmatpush3.bf16.msra.mxu0 %v908_v29 }
  0x46   : > { %836 = vmatpush3.bf16.msra.mxu1 %v909_v30 }
  0x48   : > { %542 = vmatmul.mubr.bf16.vlgmr.msra.gmra.mrb[0].mxu0 %v910_v31 }
  0x49   : > { %838 = vmatmul.mubr.bf16.vlgmr.msra.gmra.mrb[0].mxu1 %v913_v32 }
 0x11b   : > { %v806_v33 = vpop.f32.mrb[0].mxu0 }
 0x11c   : > { %v584_v34 = vpop.f32.mrb[0].mxu1  ;;  %v807_v35 = vpop.f32.mrb[1].mxu0 }
 0x11d   : > { %v808_v36 = vadd.f32 %v807_v35, %v806_v33  ;;  %v839_v37 = vpop.f32.mrb[1].mxu1  ;;  %v809_v38 = vpop.f32.mrb[2].mxu0 }
 0x11e   : > { %v587_v40 = vpop.f32.mrb[2].mxu1  ;;  %v810_v41 = vpop.f32.mrb[3].mxu0 }
 0x11f   : > { %v585_v42 = vadd.f32 %v808_v36, %v584_v34  ;;  %v811_v43 = vadd.f32 %v810_v41, %v809_v38  ;;  %v840_v44 = vpop.f32.mrb[3].mxu1  ;;  %598 = sbr.rel (%p774_p11) target bundleno = 306 (0x132), region = 66 }
 0x121   : > { %v591_v46 = vadd.f32 %v585_v42, %v295_v39  ;;  %v588_v47 = vadd.f32 %v811_v43, %v587_v40 }
 0x123   : > { %593 = vst [vmem:[#allocation2] sm:$0xff] %v591_v46  ;;  %v592_v48 = vadd.f32 %v588_v47, %v296_v45 }
 0x125   : > { %594 = vst [vmem:[#allocation2 + $0x8] sm:$0xff] %v592_v48 }
 0x12a   : > { %v599_v49 = vld [vmem:[#allocation2] sm:$0xff] }
 0x12b   : > { %v608_v52 = vadd.f32 %v775_v51, %v599_v49 }
 0x12c   : > { %v600_v50 = vld [vmem:[#allocation2 + $0x8] sm:$0xff] }
 0x12d   : > { %v609_v53 = vadd.f32 %v775_v51, %v600_v50 }
 0x12f   : > { %v788_v54 = vpack.c.bf16 %v609_v53, %v608_v52 }
 0x131   : > { %789 = vst [vmem:[%s1084_s3] sm:$0xff] %v788_v54  }
 0x132 PF: > { %s13_s16 = sadd.s32 1, %s952_s16   ;;  %s1085_s12 = smov %s940_s13 }
 0x133   : > { %p10_p12 = scmp.ge.s32.totalorder %s13_s16, 4   ;;  %s1086_s13 = smov %s1012_s20 }
 0x134   : > { %s1087_s14 = smov %s948_s15  ;;  %s1088_s15 = smov %s1090_s17 }
 0x135   :  { %12 = sbr.rel (!%p10_p12) target bundleno = 3 (0x3), region = 113 }

// kernel: clip_base_patch16_224_1P_forward.13
= control target key start
LH: loop header
LB: loop body
LE: loop exit
PB: predicated region body
PF: predicated region fallthrough
CT: control target
= control target key end

     0   :  { %s155_s0 = inlined_call_operand.vmem [shape: bf16[24,128], index: 0, kind: input, shape index: {}]   ;;  %s156_s1 = inlined_call_operand.vmem [shape: f32[1,128], index: 1, kind: input, shape index: {}]   ;;  %s157_s2 = inlined_call_operand.vmem [shape: f32[1,128], index: 2, kind: input, shape index: {}]   ;;  %s158_s3 = inlined_call_operand.vmem [shape: bf16[24,128], index: 3, kind: output, shape index: {}]  }
   0x1   :  { %v103_v0 = vld [vmem:[%s155_s0] sm:$0xff]   ;;  %v16_v1 = vld [vmem:[%s155_s0 + $0x8] sm:$0xf] }
   0x2   :  { %v104_v2 = vunpack.c.l.bf16 %v103_v0  ;;  %v19_v3 = vunpack.c.l.bf16 %v16_v1  ;;  %v105_v4 = vunpack.c.h.bf16 %v103_v0  ;;  %v94_v28 = vld [vmem:[%s156_s1] ss:$0 sm:$0xff] }
   0x3   :  { %v95_v34 = vld [vmem:[%s157_s2] ss:$0 sm:$0xff] }
   0x4   :  { %20 = vadd.xlane.f32.xlu0 %v104_v2  ;;  %24 = vadd.xlane.f32.xlu1 %v19_v3 }
   0x8   :  { %22 = vadd.xlane.f32.xlu0 %v105_v4 }
  0x91   :  { %v21_v5 = vpop.xlane.xlu0 %20  ;;  %v25_v6 = vpop.xlane.xlu1 %24 }
  0x92   :  { %v27_v7 = vmul.f32 0.0078125, %v21_v5  ;;  %v29_v8 = vmul.f32 0.0078125, %v25_v6 }
  0x94   :  { %v30_v9 = vsub.f32 %v104_v2, %v27_v7  ;;  %v32_v10 = vsub.f32 %v19_v3, %v29_v8 }
  0x95   :  { %v23_v11 = vpop.xlane.xlu0 %22 }
  0x96   :  { %v28_v12 = vmul.f32 0.0078125, %v23_v11  ;;  %v33_v13 = vmul.f32 %v30_v9, %v30_v9  ;;  %v35_v15 = vmul.f32 %v32_v10, %v32_v10 }
  0x98   :  { %v31_v14 = vsub.f32 %v105_v4, %v28_v12  ;;  %36 = vadd.xlane.f32.xlu1 %v33_v13 }
  0x9a   :  { %v34_v16 = vmul.f32 %v31_v14, %v31_v14 }
  0x9c   :  { %40 = vadd.xlane.f32.xlu1 %v35_v15  ;;  %38 = vadd.xlane.f32.xlu0 %v34_v16 }
 0x125   :  { %v37_v17 = vpop.xlane.xlu1 %36 }
 0x126   :  { %v42_v18 = vmul.f32 0.0078125, %v37_v17 }
 0x128   :  { %v45_v19 = vadd.f32 1e-05, %v42_v18 }
 0x129   :  { %v41_v20 = vpop.xlane.xlu1 %40  ;;  %v39_v21 = vpop.xlane.xlu0 %38 }
 0x12a   :  { %111 = vrsqrt.f32 %v45_v19  ;;  %v44_v22 = vmul.f32 0.0078125, %v41_v20  ;;  %v43_v23 = vmul.f32 0.0078125, %v39_v21 }
 0x12c   :  { %v47_v24 = vadd.f32 1e-05, %v44_v22  ;;  %v46_v25 = vadd.f32 1e-05, %v43_v23 }
 0x12e   :  { %113 = vrsqrt.f32 %v47_v24 }
 0x12f   :  { %115 = vrsqrt.f32 %v46_v25 }
 0x134   :  { %v112_v26 = vpop.eup %111 }
 0x135   :  { %v51_v27 = vmul.f32 %v112_v26, %v30_v9 }
 0x137   :  { %v61_v32 = vmul.f32 %v94_v28, %v51_v27 }
 0x138   :  { %v114_v29 = vpop.eup %113 }
 0x139   :  { %v116_v30 = vpop.eup %115  ;;  %v53_v31 = vmul.f32 %v114_v29, %v32_v10  ;;  %v71_v38 = vadd.f32 %v95_v34, %v61_v32 }
 0x13a   :  { %v52_v33 = vmul.f32 %v116_v30, %v31_v14 }
 0x13b   :  { %v63_v35 = vmul.f32 %v94_v28, %v53_v31 }
 0x13c   :  { %v62_v36 = vmul.f32 %v94_v28, %v52_v33 }
 0x13d   :  { %v73_v37 = vadd.f32 %v95_v34, %v63_v35 }
 0x13e   :  { %v72_v39 = vadd.f32 %v95_v34, %v62_v36 }
 0x13f   :  { %v101_v40 = vpack.c.bf16 %v73_v37, %v73_v37 }
 0x140   :  { %v109_v41 = vpack.c.bf16 %v72_v39, %v71_v38 }
 0x141   :  { %89 = vst [vmem:[%s158_s3 + $0x8] sm:$0xf] %v101_v40 }
 0x142   :  { %110 = vst [vmem:[%s158_s3] sm:$0xff] %v109_v41  }

// kernel: clip_base_patch16_224_1P_forward.15
= control target key start
LH: loop header
LB: loop body
LE: loop exit
PB: predicated region body
PF: predicated region fallthrough
CT: control target
= control target key end

     0   :  { %s995_s12 = smov 0   ;;  %s997_s13 = smov 0   ;;  %s1120_s0 = inlined_call_operand.vmem [shape: bf16[2,10,384], index: 0, kind: input, shape index: {}, may-alias: {0,1,2}]   ;;  %s1121_s1 = inlined_call_operand.vmem [shape: bf16[2,10,384], index: 1, kind: input, shape index: {}, may-alias: {0,1,2}]   ;;  %s1122_s2 = inlined_call_operand.vmem [shape: bf16[2,10,384], index: 2, kind: input, shape index: {}, may-alias: {0,1,2}]   ;;  %s1123_s3 = inlined_call_operand.vmem [shape: bf16[2,10,128], index: 3, kind: output, shape index: {}]  }
   0x1   :  { %s999_s14 = smov 0   ;;  %s1001_s15 = smov 0  }
   0x2   :  { %s1003_s16 = smov 0  }
   0x3 LB: > { %s25_s17 = sadd.s32 1, %s966_s15  ;;  %p41_p1 = scmp.ne.s32.totalorder %s958_s13, %s954_s12  ;;  %s970_s16 = sphi %s1003_s16, %s13_s16   ;;  %s966_s15 = sphi %s1001_s15, %s1128_s15   ;;  %s962_s14 = sphi %s999_s14, %s1127_s14   ;;  %s958_s13 = sphi %s997_s13, %s1126_s13   ;;  %s954_s12 = sphi %s995_s12, %s1125_s12  }
   0x4   : > { %p27_p0 = scmp.ge.s32.totalorder %s25_s17, 2  ;;  %p42_p2 = scmp.eq.s32.totalorder %s970_s16, 0 }
   0x5   : > { %s34_s20 = sadd.s32 1, %s958_s13  ;;  %p803_p5 = scmp.ge.s32.totalorder %s970_s16, 2 }
   0x6   : > { %s1130_s17 = smov (%p27_p0, %s25_s17), 0  ;;  %p1026_p3 = por %p42_p2, %p41_p1 }
   0x7   : > { %s29_s19 = ssub.s32 %s966_s15, %s1130_s17  ;;  %155 = sbr.rel (%p803_p5) target bundleno = 35 (0x23), region = 16 }
   0x8   : > { %p32_p4 = scmp.eq.s32.totalorder %s29_s19, 0 }
   0xa   : > { %s1034_s21 = scalar_select %p32_p4, %s958_s13, %s34_s20  }
   0xe   : > { %158 = sbr.rel (!%p1026_p3) target bundleno = 21 (0x15), region = 20  ;;  %s160_s22 = sand.u32 (%p1026_p3), 1, %s958_s13  }
   0xf   : > { %s865_s23 = smul.u32 (%p1026_p3), 24, %s966_s15  ;;  %s804_s24 = sshll.u32 (%p1026_p3), %s160_s22, 3 }
  0x10   : > { %s162_s28 = scalar_lea.vmem (%p1026_p3), [#allocation2], %s804_s24 }
  0x11   : > { %s166_s27 = scalar_lea.vmem (%p1026_p3), %s1120_s0, %s865_s23 }
  0x12   : > { %v182_v0 = vld [vmem:[%s166_s27] sm:$0xf] (%p1026_p3)  ;;  %v184_v1 = vld [vmem:[%s166_s27 + $0xc] sm:$0xf] (%p1026_p3) }
  0x13   : > { %183 = vst [vmem:[%s162_s28] sm:$0xf] (%p1026_p3), %v182_v0  ;;  %185 = vst [vmem:[%s162_s28 + $0x4] sm:$0xf] (%p1026_p3), %v184_v1 }
  0x15 PF: > { %212 = sbr.rel (!%p1026_p3) target bundleno = 28 (0x1c), region = 61  ;;  %s214_s29 = sand.u32 (%p1026_p3), 1, %s958_s13  }
  0x16   : > { %s807_s30 = smul.u32 (%p1026_p3), 24, %s966_s15  ;;  %s806_s4 = sshll.u32 (%p1026_p3), %s214_s29, 3 }
  0x17   : > { %s216_s8 = scalar_lea.vmem (%p1026_p3), [#allocation3], %s806_s4 }
  0x18   : > { %s711_s7 = scalar_lea.vmem (%p1026_p3), %s1121_s1, %s807_s30 }
  0x19   : > { %v808_v2 = vld [vmem:[%s711_s7 + $0x4] sm:$0xf] (%p1026_p3)  ;;  %v809_v3 = vld [vmem:[%s711_s7 + $0x10] sm:$0xf] (%p1026_p3) }
  0x1a   : > { %238 = vst [vmem:[%s216_s8] sm:$0xf] (%p1026_p3), %v808_v2  ;;  %240 = vst [vmem:[%s216_s8 + $0x4] sm:$0xf] (%p1026_p3), %v809_v3 }
  0x1c PF: > { %267 = sbr.rel (!%p1026_p3) target bundleno = 35 (0x23), region = 102  ;;  %s269_s9 = sand.u32 (%p1026_p3), 1, %s958_s13  }
  0x1d   : > { %s811_s10 = smul.u32 (%p1026_p3), 24, %s966_s15  ;;  %s810_s11 = sshll.u32 (%p1026_p3), %s269_s9, 3 }
  0x1e   : > { %s271_s23 = scalar_lea.vmem (%p1026_p3), [#allocation4], %s810_s11 }
  0x1f   : > { %s718_s22 = scalar_lea.vmem (%p1026_p3), %s1122_s2, %s811_s10 }
  0x20   : > { %v812_v4 = vld [vmem:[%s718_s22 + $0x8] sm:$0xf] (%p1026_p3)  ;;  %v813_v5 = vld [vmem:[%s718_s22 + $0x14] sm:$0xf] (%p1026_p3) }
  0x21   : > { %293 = vst [vmem:[%s271_s23] sm:$0xf] (%p1026_p3), %v812_v4  ;;  %295 = vst [vmem:[%s271_s23 + $0x4] sm:$0xf] (%p1026_p3), %v813_v5 }
  0x23 PF: > { %p814_p6 = scmp.ge.s32.totalorder %s970_s16, 1  ;;  %p321_p7 = scmp.lt.s32.totalorder %s970_s16, 3 }
  0x25   : > { %p322_p8 = pnand %p814_p6, %p321_p7 }
  0x26   : > { %s328_s18 = sand.u32 (!%p322_p8), 1, %s954_s12   ;;  %v972_v6 = vmov (!%p322_p8), 0.0   ;;  %vm973_vm0 = vmmov (!%p322_p8), 0   ;;  %vm403_vm1 = vcmask (!%p322_p8), 523264   ;;  %vm451_vm2 = vcmask (!%p322_p8), 80896   ;;  %s974_s26 = smov (!%p322_p8), 64  }
  0x27   : > { %325 = sbr.rel (%p322_p8) target bundleno = 1457 (0x5b1), region = 143  ;;  %841 = vmatprep.subr.bf16.mxu0 (!%p322_p8), %v972_v6  ;;  %s1062_s24 = sshll.u32 (!%p322_p8), %s328_s18, 3  ;;  %843 = vmatprep.mubr.msk.bf16.mxu0 (!%p322_p8), %vm973_vm0, %v972_v6  ;;  %vm455_vm3 = vcmask (!%p322_p8), 74752   ;;  %vm484_vm4 = vcmask (!%p322_p8), 1044480  }
  0x28   : > { %847 = vmatprep.subr.bf16.mxu1 (!%p322_p8), %v972_v6  ;;  %849 = vmatprep.mubr.msk.bf16.mxu1 (!%p322_p8), %vm973_vm0, %v972_v6  ;;  %s330_s25 = scalar_lea.vmem (!%p322_p8), [#allocation2], %s1062_s24  ;;  %s337_s12 = scalar_lea.vmem (!%p322_p8), [#allocation3], %s1062_s24 }
  0x29   : > { %v387_v7 = vld [vmem:[%s330_s25] sm:$0xf] (!%p322_p8)  ;;  %v388_v8 = vld [vmem:[%s330_s25 + $0x4] sm:$0x1] (!%p322_p8)  ;;  %v914_v9 = vld [vmem:[%s337_s12] sm:$0x1f] (!%p322_p8)  }
  0x2a   : > { %v389_v10 = vunpack.c.l.bf16 (!%p322_p8), %v387_v7  ;;  %v390_v11 = vunpack.c.l.bf16 (!%p322_p8), %v388_v8  ;;  %v408_v12 = vsel (!%p322_p8), %vm403_vm1, %v914_v9, 0  ;;  %s344_s27 = scalar_lea.vmem (!%p322_p8), [#allocation4], %s1062_s24  ;;  %p378_p9 = scmp.lt.s32.totalorder (!%p322_p8), %s962_s14, 1 }
  0x2b   : > { %842 = vmatpush3.bf16.xpose.msra.mxu0 (!%p322_p8), %v408_v12  ;;  %v915_v32 = vld [vmem:[%s344_s27] sm:$0x1f] (!%p322_p8)  }
  0x2c   : > { %v391_v13 = vmul.f32 (!%p322_p8), 0.125, %v389_v10  ;;  %v392_v14 = vmul.f32 (!%p322_p8), 0.125, %v390_v11  ;;  %859 = vmatprep.subr.bf16.mxu0 (!%p322_p8), %v972_v6  ;;  %v486_v33 = vsel (!%p322_p8), %vm484_vm4, %v915_v32, 0 }
  0x2d   : > { %848 = vmatpush3.bf16.msra.mxu1 (!%p322_p8), %v486_v33 }
  0x2e   : > { %v393_v15 = vpack.c.bf16 %v392_v14, %v391_v13  ;;  %853 = vmatprep.subr.bf16.mxu1 %v972_v6  ;;  %s1132_s14 = smov (!%p378_p9, %s962_s14), 1 }
  0x2f   : > { %s830_s28 = sshll.u32 %s1132_s14, 3 }
  0x30   : > { %s385_s4 = scalar_lea.vmem %s1123_s3, %s830_s28 }
  0x32   : > { %844 = vmatmul.mubr.msk.bf16.vlgmr.msra.gmra.mrb[0].mxu0 %vm403_vm1, %v393_v15 }
  0x33   : > { %861 = vmatprep.mubr.msk.bf16.mxu0 %vm973_vm0, %v972_v6 }
 0x105   : > { %v444_v16 = vpop.f32.mrb[0].mxu0 }
 0x106   : > { %v845_v17 = vpop.f32.mrb[1].mxu0  ;;  %v452_v18 = vsel %vm451_vm2, %v444_v16, -inf }
 0x107   : > { %453 = vmax.xlane.f32.xlu0 %v452_v18  ;;  %v447_v19 = vpop.f32.mrb[2].mxu0 }
 0x108   : > { %v846_v20 = vpop.f32.mrb[3].mxu0  ;;  %v456_v21 = vsel %vm455_vm3, %v447_v19, -inf }
 0x10b   : > { %457 = vmax.xlane.f32.xlu0 %v456_v21 }
 0x121   : > { %532 = vrot.lane.b32.xlu0 %v914_v9, %s974_s26 }
 0x194   : > { %v454_v22 = vpop.xlane.xlu0 %453 }
 0x195   : > { %v459_v23 = vsub.f32 %v444_v16, %v454_v22 }
 0x197   : > { %v461_v24 = vmul.f32 1.442695, %v459_v23 }
 0x198   : > { %v458_v25 = vpop.xlane.xlu0 %457 }
 0x199   : > { %916 = vpow2.f32 %v461_v24  ;;  %v460_v26 = vsub.f32 %v447_v19, %v458_v25 }
 0x19b   : > { %v463_v27 = vmul.f32 1.442695, %v460_v26 }
 0x19c   : > { %v533_v38 = vpop.permute.xlu0 %532 }
 0x19d   : > { %918 = vpow2.f32 %v463_v27  ;;  %v538_v41 = vsel %vm403_vm1, %v533_v38, 0 }
 0x1a3   : > { %v917_v28 = vpop.eup %916 }
 0x1a4   : > { %v465_v29 = vsel %vm451_vm2, %v917_v28, 0.0 }
 0x1a5   : > { %466 = vadd.xlane.f32.xlu1 %v465_v29 }
 0x1a7   : > { %v919_v30 = vpop.eup %918 }
 0x1a8   : > { %v468_v31 = vsel %vm455_vm3, %v919_v30, 0.0 }
 0x1a9   : > { %469 = vadd.xlane.f32.xlu1 %v468_v31 }
 0x1ba   : > { %530 = vrot.lane.b32.xlu1 %v393_v15, %s974_s26 }
 0x232   : > { %v467_v34 = vpop.xlane.xlu1 %466 }
 0x233   : > { %920 = vrcp.f32 %v467_v34 }
 0x236   : > { %v470_v35 = vpop.xlane.xlu1 %469 }
 0x237   : > { %922 = vrcp.f32 %v470_v35 }
 0x23a   : > { %v531_v43 = vpop.permute.xlu1 %530 }
 0x23d   : > { %v921_v36 = vpop.eup %920 }
 0x23e   : > { %v473_v39 = vmul.f32 %v921_v36, %v917_v28 }
 0x241   : > { %v923_v37 = vpop.eup %922 }
 0x242   : > { %v474_v40 = vmul.f32 %v923_v37, %v919_v30 }
 0x244   : > { %v475_v42 = vpack.c.bf16 %v474_v40, %v473_v39 }
 0x246   : > { %850 = vmatmul.mubr.msk.bf16.vlgmr.msra.gmra.mrb[0].mxu1 %vm451_vm2, %v475_v42 }
 0x247   : > { %854 = vmatpush3.bf16.xpose.msra.mxu1 %v538_v41  ;;  %855 = vmatprep.mubr.msk.bf16.mxu1 %vm973_vm0, %v972_v6 }
 0x24e   : > { %856 = vmatmul.mubr.msk.bf16.vlgmr.msra.gmra.mrb[4].mxu1 %vm403_vm1, %v531_v43 }
 0x319   : > { %v522_v44 = vpop.f32.mrb[0].mxu1 }
 0x31a   : > { %v851_v45 = vpop.f32.mrb[1].mxu1 }
 0x31b   : > { %v525_v46 = vpop.f32.mrb[2].mxu1 }
 0x31c   : > { %v852_v47 = vpop.f32.mrb[3].mxu1 }
 0x321   : > { %v574_v48 = vpop.f32.mrb[4].mxu1 }
 0x322   : > { %v857_v49 = vpop.f32.mrb[5].mxu1  ;;  %v581_v50 = vsel %vm451_vm2, %v574_v48, -inf }
 0x323   : > { %582 = vmax.xlane.f32.xlu1 %v581_v50  ;;  %v577_v51 = vpop.f32.mrb[6].mxu1 }
 0x324   : > { %v858_v52 = vpop.f32.mrb[7].mxu1  ;;  %v584_v53 = vsel %vm455_vm3, %v577_v51, -inf }
 0x325   : > { %585 = vmax.xlane.f32.xlu0 %v584_v53 }
 0x3b0   : > { %v583_v54 = vpop.xlane.xlu1 %582 }
 0x3b1   : > { %v587_v55 = vsub.f32 %v574_v48, %v583_v54 }
 0x3b2   : > { %v586_v56 = vpop.xlane.xlu0 %585 }
 0x3b3   : > { %v589_v57 = vmul.f32 1.442695, %v587_v55  ;;  %v588_v58 = vsub.f32 %v577_v51, %v586_v56 }
 0x3b5   : > { %924 = vpow2.f32 %v589_v57  ;;  %v591_v59 = vmul.f32 1.442695, %v588_v58 }
 0x3b7   : > { %926 = vpow2.f32 %v591_v59 }
 0x3bf   : > { %v925_v60 = vpop.eup %924 }
 0x3c0   : > { %v593_v61 = vsel %vm451_vm2, %v925_v60, 0.0 }
 0x3c1   : > { %v927_v62 = vpop.eup %926  ;;  %594 = vadd.xlane.f32.xlu0 %v593_v61 }
 0x3c2   : > { %v596_v63 = vsel %vm455_vm3, %v927_v62, 0.0 }
 0x3c3   : > { %597 = vadd.xlane.f32.xlu1 %v596_v63 }
 0x3d7   : > { %604 = vrot.lane.b32.xlu0 %v915_v32, %s974_s26 }
 0x44e   : > { %v595_v0 = vpop.xlane.xlu0 %594 }
 0x44f   : > { %928 = vrcp.f32 %v595_v0 }
 0x450   : > { %v598_v1 = vpop.xlane.xlu1 %597 }
 0x451   : > { %930 = vrcp.f32 %v598_v1 }
 0x452   : > { %v605_v2 = vpop.permute.xlu0 %604 }
 0x453   : > { %v610_v3 = vsel %vm484_vm4, %v605_v2, 0 }
 0x454   : > { %860 = vmatpush3.bf16.msra.mxu0 %v610_v3 }
 0x459   : > { %v929_v4 = vpop.eup %928 }
 0x45a   : > { %v601_v6 = vmul.f32 %v929_v4, %v925_v60 }
 0x45b   : > { %v931_v5 = vpop.eup %930 }
 0x45c   : > { %v602_v7 = vmul.f32 %v931_v5, %v927_v62 }
 0x45e   : > { %v603_v8 = vpack.c.bf16 %v602_v7, %v601_v6 }
 0x460   : > { %862 = vmatmul.mubr.msk.bf16.vlgmr.msra.gmra.mrb[4].mxu0 %vm451_vm2, %v603_v8 }
 0x533   : > { %v646_v9 = vpop.f32.mrb[4].mxu0 }
 0x534   : > { %v863_v10 = vpop.f32.mrb[5].mxu0 }
 0x535   : > { %v649_v11 = vpop.f32.mrb[6].mxu0 }
 0x536   : > { %v909_v12 = vpack.i.bf16 %v649_v11, %v646_v9  ;;  %v864_v13 = vpop.f32.mrb[7].mxu0 }
 0x538   : > { %910 = vrot.lane.b32.xlu1 %v909_v12, %s974_s26 }
 0x5aa   : > { %v911_v14 = vpop.permute.xlu1 %910 }
 0x5ab   : > { %v913_v15 = vunpack.i.h.bf16 %v911_v14  ;;  %v912_v16 = vunpack.i.l.bf16 %v911_v14 }
 0x5ad   : > { %v662_v17 = vsel %vm403_vm1, %v525_v46, %v913_v15  ;;  %v661_v18 = vsel %vm403_vm1, %v522_v44, %v912_v16 }
 0x5ae   : > { %v832_v19 = vpack.c.bf16 %v662_v17, %v662_v17  ;;  %v831_v20 = vpack.c.bf16 %v661_v18, %v661_v18 }
 0x5b0   : > { %672 = vst [vmem:[%s385_s4 + $0x4] sm:$0x1] %v832_v19  ;;  %671 = vst [vmem:[%s385_s4] sm:$0xf] %v831_v20 }
 0x5b1 PF: > { %s13_s16 = sadd.s32 1, %s970_s16   ;;  %s1125_s12 = smov %s958_s13 }
 0x5b2   : > { %p10_p10 = scmp.ge.s32.totalorder %s13_s16, 4   ;;  %s1126_s13 = smov %s1034_s21 }
 0x5b3   : > { %s1127_s14 = smov %s966_s15  ;;  %s1128_s15 = smov %s1130_s17 }
 0x5b4   :  { %12 = sbr.rel (!%p10_p10) target bundleno = 3 (0x3), region = 206 }

// kernel: clip_base_patch16_224_1P_forward.16
= control target key start
LH: loop header
LB: loop body
LE: loop exit
PB: predicated region body
PF: predicated region fallthrough
CT: control target
= control target key end

     0   :  { %s340_s1 = inlined_call_operand.vmem [shape: bf16[128,128], index: 1, kind: input, shape index: {}]   ;;  %s341_s0 = inlined_call_operand.vmem [shape: bf16[24,128], index: 0, kind: input, shape index: {}]   ;;  %s342_s3 = inlined_call_operand.vmem [shape: bf16[24,128], index: 3, kind: input, shape index: {}]   ;;  %s343_s2 = inlined_call_operand.vmem [shape: f32[1,128], index: 2, kind: input, shape index: {}]   ;;  %s344_s4 = inlined_call_operand.vmem [shape: bf16[24,128], index: 4, kind: output, shape index: {}]  }
   0x1   :  { %v260_v0 = vld [vmem:[%s340_s1] sm:$0xff]   ;;  %v261_v1 = vld [vmem:[%s340_s1 + $0x8] sm:$0xff]   ;;  %v262_v2 = vld [vmem:[%s340_s1 + $0x10] sm:$0xff]  }
   0x2   :  { %240 = vmatprep.subr.bf16.mxu0 %v260_v0  ;;  %v263_v3 = vld [vmem:[%s340_s1 + $0x18] sm:$0xff]   ;;  %v268_v4 = vld [vmem:[%s341_s0] sm:$0xff]   ;;  %v265_v6 = vld [vmem:[%s340_s1 + $0x28] sm:$0xff]  }
   0x3   :  { %241 = vmatpush3.bf16.msra.mxu0 %v260_v0  ;;  %256 = vmatprep.mubr.bf16.mxu0 %v268_v4  ;;  %v264_v5 = vld [vmem:[%s340_s1 + $0x20] sm:$0xff]   ;;  %v266_v7 = vld [vmem:[%s340_s1 + $0x30] sm:$0xff]   ;;  %v267_v8 = vld [vmem:[%s340_s1 + $0x38] sm:$0xff]  }
   0x4   :  { %242 = vmatprep.subr.bf16.mxu0 %v261_v1  ;;  %v269_v9 = vld [vmem:[%s341_s0 + $0x8] ss:$0 sps:$4 sm:$0xff]   ;;  %v214_v11 = vld [vmem:[%s343_s2] ss:$0 sm:$0xff] }
   0x5   :  { %v177_v10 = vld [vmem:[%s342_s3 + $0x8] sm:$0xf]  ;;  %v222_v13 = vld [vmem:[%s342_s3] sm:$0xff]  }
   0x6   :  { %v180_v12 = vunpack.c.l.bf16 %v177_v10  ;;  %v223_v18 = vunpack.c.l.bf16 %v222_v13  ;;  %v224_v20 = vunpack.c.h.bf16 %v222_v13 }
   0x7   :  { %243 = vmatpush3.bf16.msra.mxu0 %v261_v1 }
   0x8   :  { %244 = vmatprep.subr.bf16.mxu0 %v262_v2 }
   0xb   :  { %245 = vmatpush3.bf16.msra.mxu0 %v262_v2 }
   0xc   :  { %246 = vmatprep.subr.bf16.mxu0 %v263_v3 }
   0xf   :  { %247 = vmatpush3.bf16.msra.mxu0 %v263_v3 }
  0x10   :  { %248 = vmatprep.subr.bf16.mxu0 %v264_v5 }
  0x13   :  { %249 = vmatpush3.bf16.msra.mxu0 %v264_v5 }
  0x14   :  { %250 = vmatprep.subr.bf16.mxu0 %v265_v6 }
  0x17   :  { %251 = vmatpush3.bf16.msra.mxu0 %v265_v6 }
  0x18   :  { %252 = vmatprep.subr.bf16.mxu0 %v266_v7 }
  0x1b   :  { %253 = vmatpush3.bf16.msra.mxu0 %v266_v7 }
  0x1c   :  { %254 = vmatprep.subr.bf16.mxu0 %v267_v8 }
  0x1f   :  { %255 = vmatpush3.bf16.msra.mxu0 %v267_v8 }
  0x22   :  { %257 = vmatmul.mubr.bf16.vlgmr.msra.gmra.mrb[0].mxu0 %v269_v9 }
  0xf5   :  { %v258_v14 = vpop.f32.mrb[0].mxu0 }
  0xf6   :  { %v174_v15 = vadd.f32 %v258_v14, %v214_v11  ;;  %v139_v16 = vpop.f32.mrb[1].mxu0 }
  0xf7   :  { %v172_v17 = vadd.f32 %v214_v11, %v139_v16  ;;  %v259_v19 = vpop.f32.mrb[2].mxu0 }
  0xf8   :  { %v183_v21 = vadd.f32 %v180_v12, %v174_v15  ;;  %v142_v22 = vpop.f32.mrb[3].mxu0 }
  0xf9   :  { %v173_v23 = vadd.f32 %v214_v11, %v142_v22  ;;  %v181_v25 = vadd.f32 %v223_v18, %v172_v17 }
  0xfa   :  { %v220_v24 = vpack.c.bf16 %v183_v21, %v183_v21 }
  0xfb   :  { %v182_v26 = vadd.f32 %v224_v20, %v173_v23 }
  0xfc   :  { %199 = vst [vmem:[%s344_s4 + $0x8] sm:$0xf] %v220_v24 }
  0xfd   :  { %v228_v27 = vpack.c.bf16 %v182_v26, %v181_v25 }
  0xff   :  { %229 = vst [vmem:[%s344_s4] sm:$0xff] %v228_v27  }

// kernel: clip_base_patch16_224_1P_forward.14
= control target key start
LH: loop header
LB: loop body
LE: loop exit
PB: predicated region body
PF: predicated region fallthrough
CT: control target
= control target key end

     0   :  { %v513_v37 = vmov 0   ;;  %s664_s0 = inlined_call_operand.vmem [shape: bf16[24,128], index: 0, kind: input, shape index: {}]   ;;  %s665_s3 = inlined_call_operand.vmem [shape: bf16[128,384], index: 3, kind: input, shape index: {}]   ;;  %s666_s1 = inlined_call_operand.vmem [shape: f32[1,128], index: 1, kind: input, shape index: {}]   ;;  %s667_s2 = inlined_call_operand.vmem [shape: f32[1,128], index: 2, kind: input, shape index: {}]   ;;  %s668_s4 = inlined_call_operand.vmem [shape: f32[1,384], index: 4, kind: input, shape index: {}]   ;;  %s669_s5 = inlined_call_operand.vmem [shape: bf16[24,384], index: 5, kind: output, shape index: {}]  }
   0x1   :  { %v441_v0 = vld [vmem:[%s664_s0] sm:$0xff]   ;;  %v23_v1 = vld [vmem:[%s664_s0 + $0x8] sm:$0xf]  ;;  %v485_v24 = vld [vmem:[%s665_s3 + $0x30] ss:$12 sps:$4 sm:$0xff]   ;;  %292 = vmatprep.mubr.bf16.mxu0 %v513_v37 }
   0x2   :  { %v442_v2 = vunpack.c.l.bf16 %v441_v0  ;;  %v26_v3 = vunpack.c.l.bf16 %v23_v1  ;;  %v443_v4 = vunpack.c.h.bf16 %v441_v0  ;;  %v475_v5 = vld [vmem:[%s665_s3 + $0x4] ss:$12 sps:$4 sm:$0xff]   ;;  %v477_v6 = vld [vmem:[%s665_s3] ss:$12 sps:$4 sm:$0xff]   ;;  %v478_v7 = vld [vmem:[%s665_s3 + $0x8] ss:$12 sps:$4 sm:$0xff]  }
   0x3   :  { %260 = vmatprep.subr.bf16.mxu0 %v475_v5  ;;  %v479_v8 = vld [vmem:[%s665_s3 + $0x1c] ss:$12 sps:$4 sm:$0xff]   ;;  %454 = vmatprep.subr.bf16.mxu1 %v478_v7  ;;  %v481_v21 = vld [vmem:[%s665_s3 + $0x18] ss:$12 sps:$4 sm:$0xff]   ;;  %v482_v22 = vld [vmem:[%s665_s3 + $0x20] ss:$12 sps:$4 sm:$0xff]  }
   0x4   :  { %27 = vadd.xlane.f32.xlu0 %v442_v2  ;;  %31 = vadd.xlane.f32.xlu1 %v26_v3  ;;  %v483_v23 = vld [vmem:[%s665_s3 + $0x34] ss:$12 sps:$4 sm:$0xff]   ;;  %v486_v25 = vld [vmem:[%s665_s3 + $0x38] ss:$12 sps:$4 sm:$0xff]   ;;  %v490_v28 = vld [vmem:[%s665_s3 + $0x50] ss:$12 sps:$4 sm:$0xff]  }
   0x5   :  { %261 = vmatpush1.bf16.msra.mxu0 %v477_v6  ;;  %455 = vmatpush3.bf16.msra.mxu1 %v478_v7  ;;  %v487_v26 = vld [vmem:[%s665_s3 + $0x4c] ss:$12 sps:$4 sm:$0xff]   ;;  %v489_v27 = vld [vmem:[%s665_s3 + $0x48] ss:$12 sps:$4 sm:$0xff]   ;;  %v491_v29 = vld [vmem:[%s665_s3 + $0x64] ss:$12 sps:$4 sm:$0xff]  }
   0x6   :  { %262 = vmatprep.subr.bf16.mxu0 %v479_v8  ;;  %456 = vmatprep.subr.bf16.mxu1 %v482_v22  ;;  %v493_v30 = vld [vmem:[%s665_s3 + $0x60] ss:$12 sps:$4 sm:$0xff]   ;;  %v494_v31 = vld [vmem:[%s665_s3 + $0x68] ss:$12 sps:$4 sm:$0xff]   ;;  %v497_v34 = vld [vmem:[%s665_s3 + $0x78] ss:$12 sps:$4 sm:$0xff]  }
   0x7   :  { %v495_v32 = vld [vmem:[%s665_s3 + $0x7c] ss:$12 sps:$4 sm:$0xff]   ;;  %v498_v33 = vld [vmem:[%s665_s3 + $0x80] ss:$12 sps:$4 sm:$0xff]   ;;  %v502_v36 = vld [vmem:[%s665_s3 + $0x98] ss:$12 sps:$4 sm:$0xff]  }
   0x8   :  { %29 = vadd.xlane.f32.xlu0 %v443_v4  ;;  %v499_v35 = vld [vmem:[%s665_s3 + $0x94] ss:$12 sps:$4 sm:$0xff]   ;;  %v501_v38 = vld [vmem:[%s665_s3 + $0x90] ss:$12 sps:$4 sm:$0xff]   ;;  %v503_v39 = vld [vmem:[%s665_s3 + $0xac] ss:$12 sps:$4 sm:$0xff]  }
   0x9   :  { %263 = vmatpush1.bf16.msra.mxu0 %v481_v21  ;;  %457 = vmatpush3.bf16.msra.mxu1 %v482_v22  ;;  %v506_v40 = vld [vmem:[%s665_s3 + $0xb0] ss:$12 sps:$4 sm:$0xff]   ;;  %v505_v41 = vld [vmem:[%s665_s3 + $0xa8] ss:$12 sps:$4 sm:$0xff]   ;;  %v402_v53 = vld [vmem:[%s666_s1] ss:$0 sm:$0xff] }
   0xa   :  { %264 = vmatprep.subr.bf16.mxu0 %v483_v23  ;;  %458 = vmatprep.subr.bf16.mxu1 %v486_v25  ;;  %v403_v59 = vld [vmem:[%s667_s2] ss:$0 sm:$0xff] }
   0xb   :  { %v115_v6 = vld [vmem:[%s668_s4] sm:$0x7] }
   0xd   :  { %265 = vmatpush1.bf16.msra.mxu0 %v485_v24  ;;  %459 = vmatpush3.bf16.msra.mxu1 %v486_v25 }
   0xe   :  { %266 = vmatprep.subr.bf16.mxu0 %v487_v26  ;;  %460 = vmatprep.subr.bf16.mxu1 %v490_v28 }
  0x11   :  { %267 = vmatpush1.bf16.msra.mxu0 %v489_v27  ;;  %461 = vmatpush3.bf16.msra.mxu1 %v490_v28 }
  0x12   :  { %268 = vmatprep.subr.bf16.mxu0 %v491_v29  ;;  %462 = vmatprep.subr.bf16.mxu1 %v494_v31 }
  0x15   :  { %269 = vmatpush1.bf16.msra.mxu0 %v493_v30  ;;  %463 = vmatpush3.bf16.msra.mxu1 %v494_v31 }
  0x16   :  { %270 = vmatprep.subr.bf16.mxu0 %v495_v32  ;;  %464 = vmatprep.subr.bf16.mxu1 %v498_v33 }
  0x19   :  { %271 = vmatpush1.bf16.msra.mxu0 %v497_v34  ;;  %465 = vmatpush3.bf16.msra.mxu1 %v498_v33 }
  0x1a   :  { %272 = vmatprep.subr.bf16.mxu0 %v499_v35  ;;  %466 = vmatprep.subr.bf16.mxu1 %v502_v36 }
  0x1d   :  { %273 = vmatpush1.bf16.msra.mxu0 %v501_v38  ;;  %467 = vmatpush3.bf16.msra.mxu1 %v502_v36 }
  0x1e   :  { %274 = vmatprep.subr.bf16.mxu0 %v503_v39  ;;  %468 = vmatprep.subr.bf16.mxu1 %v506_v40 }
  0x21   :  { %275 = vmatpush1.bf16.msra.mxu0 %v505_v41  ;;  %469 = vmatpush3.bf16.msra.mxu1 %v506_v40 }
  0x91   :  { %v28_v9 = vpop.xlane.xlu0 %27  ;;  %v32_v10 = vpop.xlane.xlu1 %31 }
  0x92   :  { %v34_v11 = vmul.f32 0.0078125, %v28_v9  ;;  %v36_v12 = vmul.f32 0.0078125, %v32_v10 }
  0x94   :  { %v562_v13 = vsub.f32 %v442_v2, %v34_v11  ;;  %v564_v14 = vsub.f32 %v26_v3, %v36_v12  ;;  %v117_v3 = vlaneseq }
  0x95   :  { %v30_v15 = vpop.xlane.xlu0 %29 }
  0x96   :  { %v35_v16 = vmul.f32 0.0078125, %v30_v15  ;;  %v40_v17 = vmul.f32 %v562_v13, %v562_v13  ;;  %v42_v19 = vmul.f32 %v564_v14, %v564_v14 }
  0x98   :  { %v568_v18 = vsub.f32 %v443_v4, %v35_v16  ;;  %43 = vadd.xlane.f32.xlu1 %v40_v17  ;;  %v118_v4 = vshrl.u32 %v117_v3, 7 }
  0x9a   :  { %v41_v20 = vmul.f32 %v568_v18, %v568_v18  ;;  %v119_v5 = vsub.s32 0, %v118_v4  ;;  %v123_v7 = vsub.s32 1, %v118_v4  ;;  %v127_v8 = vsub.s32 2, %v118_v4 }
  0x9c   :  { %47 = vadd.xlane.f32.xlu1 %v42_v19  ;;  %45 = vadd.xlane.f32.xlu0 %v41_v20  ;;  %v120_v9 = vrot.slane %v115_v6, %v119_v5  ;;  %v124_v10 = vrot.slane %v115_v6, %v123_v7  ;;  %v128_v11 = vrot.slane %v115_v6, %v127_v8 }
 0x125   :  { %v44_v42 = vpop.xlane.xlu1 %43 }
 0x126   :  { %v49_v43 = vmul.f32 0.0078125, %v44_v42 }
 0x128   :  { %v52_v44 = vadd.f32 1e-05, %v49_v43 }
 0x129   :  { %v48_v45 = vpop.xlane.xlu1 %47  ;;  %v46_v46 = vpop.xlane.xlu0 %45 }
 0x12a   :  { %507 = vrsqrt.f32 %v52_v44  ;;  %v51_v47 = vmul.f32 0.0078125, %v48_v45  ;;  %v50_v48 = vmul.f32 0.0078125, %v46_v46 }
 0x12c   :  { %v54_v49 = vadd.f32 1e-05, %v51_v47  ;;  %v53_v50 = vadd.f32 1e-05, %v50_v48 }
 0x12e   :  { %509 = vrsqrt.f32 %v54_v49 }
 0x12f   :  { %511 = vrsqrt.f32 %v53_v50 }
 0x134   :  { %v508_v51 = vpop.eup %507 }
 0x135   :  { %v58_v52 = vmul.f32 %v508_v51, %v562_v13 }
 0x137   :  { %v68_v58 = vmul.f32 %v402_v53, %v58_v52 }
 0x138   :  { %v510_v54 = vpop.eup %509 }
 0x139   :  { %v512_v55 = vpop.eup %511  ;;  %v60_v56 = vmul.f32 %v510_v54, %v564_v14  ;;  %v78_v63 = vadd.f32 %v403_v59, %v68_v58 }
 0x13a   :  { %v59_v57 = vmul.f32 %v512_v55, %v568_v18 }
 0x13b   :  { %v70_v60 = vmul.f32 %v402_v53, %v60_v56 }
 0x13c   :  { %v69_v61 = vmul.f32 %v402_v53, %v59_v57 }
 0x13d   :  { %v80_v62 = vadd.f32 %v403_v59, %v70_v60 }
 0x13e   :  { %v79_v0 = vadd.f32 %v403_v59, %v69_v61 }
 0x13f   :  { %v82_v1 = vpack.c.bf16 %v80_v62, %v80_v62 }
 0x140   :  { %v81_v2 = vpack.c.bf16 %v79_v0, %v78_v63 }
 0x142   :  { %293 = vmatmul.mubr.bf16.vlgmr.msra.gmra.mrb[0].mxu0 %v81_v2  ;;  %470 = vmatprep.mubr.bf16.mxu1 %v81_v2 }
 0x143   :  { %471 = vmatmul.mubr.bf16.vlgmr.msra.gmra.mrb[0].mxu1 %v82_v1  ;;  %302 = vmatprep.mubr.bf16.mxu0 %v513_v37 }
 0x14a   :  { %303 = vmatmul.mubr.bf16.gmra.mrb[4].mxu0 %v82_v1 }
 0x215   :  { %v294_v12 = vpop.f32.mrb[0].mxu0 }
 0x216   :  { %v295_v13 = vadd.f32 %v294_v12, %v120_v9  ;;  %v296_v14 = vpop.f32.mrb[1].mxu0  ;;  %v472_v15 = vpop.f32.mrb[0].mxu1 }
 0x217   :  { %v297_v16 = vadd.f32 %v296_v14, %v124_v10  ;;  %v354_v17 = vadd.f32 %v472_v15, %v128_v11  ;;  %v298_v18 = vpop.f32.mrb[2].mxu0  ;;  %v345_v19 = vpop.f32.mrb[1].mxu1 }
 0x218   :  { %v299_v20 = vadd.f32 %v298_v18, %v120_v9  ;;  %v346_v21 = vadd.f32 %v345_v19, %v128_v11  ;;  %v300_v22 = vpop.f32.mrb[3].mxu0  ;;  %v473_v23 = vpop.f32.mrb[2].mxu1 }
 0x219   :  { %v434_v24 = vpack.c.bf16 %v297_v16, %v295_v13  ;;  %v439_v25 = vpack.c.bf16 %v354_v17, %v354_v17  ;;  %v301_v26 = vadd.f32 %v300_v22, %v124_v10  ;;  %v348_v27 = vpop.f32.mrb[3].mxu1 }
 0x21a   :  { %v435_v28 = vpack.c.bf16 %v346_v21, %v346_v21  ;;  %v349_v29 = vadd.f32 %v348_v27, %v128_v11 }
 0x21b   :  { %392 = vst [vmem:[%s669_s5] sm:$0xff] %v434_v24  ;;  %397 = vst [vmem:[%s669_s5 + $0x20] sm:$0xf] %v439_v25  ;;  %v436_v30 = vpack.c.bf16 %v301_v26, %v299_v20 }
 0x21c   :  { %393 = vst [vmem:[%s669_s5 + $0x8] sm:$0xf] %v435_v28  ;;  %v437_v31 = vpack.c.bf16 %v349_v29, %v349_v29 }
 0x21d   :  { %394 = vst [vmem:[%s669_s5 + $0xc] sm:$0xff] %v436_v30  ;;  %v304_v32 = vpop.f32.mrb[4].mxu0 }
 0x21e   :  { %395 = vst [vmem:[%s669_s5 + $0x14] sm:$0xf] %v437_v31  ;;  %v305_v33 = vadd.f32 %v304_v32, %v120_v9  ;;  %v306_v34 = vpop.f32.mrb[5].mxu0 }
 0x21f   :  { %v307_v35 = vadd.f32 %v306_v34, %v124_v10  ;;  %v308_v36 = vpop.f32.mrb[6].mxu0 }
 0x220   :  { %v309_v37 = vpop.f32.mrb[7].mxu0 }
 0x221   :  { %v438_v38 = vpack.c.bf16 %v307_v35, %v305_v33 }
 0x223   :  { %396 = vst [vmem:[%s669_s5 + $0x18] sm:$0xff] %v438_v38 }

// kernel: clip_base_patch16_224_1P_forward.17
= control target key start
LH: loop header
LB: loop body
LE: loop exit
PB: predicated region body
PF: predicated region fallthrough
CT: control target
= control target key end

     0   :  { %v710_v43 = vmov 0   ;;  %s933_s0 = inlined_call_operand.vmem [shape: bf16[24,128], index: 0, kind: input, shape index: {}]   ;;  %s934_s3 = inlined_call_operand.vmem [shape: bf16[128,512], index: 3, kind: input, shape index: {}]   ;;  %s935_s1 = inlined_call_operand.vmem [shape: f32[1,128], index: 1, kind: input, shape index: {}]   ;;  %s936_s2 = inlined_call_operand.vmem [shape: f32[1,128], index: 2, kind: input, shape index: {}]   ;;  %s937_s4 = inlined_call_operand.vmem [shape: f32[1,512], index: 4, kind: input, shape index: {}]   ;;  %s938_s5 = inlined_call_operand.vmem [shape: bf16[24,512], index: 5, kind: output, shape index: {}]  }
   0x1   :  { %v604_v0 = vld [vmem:[%s933_s0] sm:$0xff]   ;;  %v23_v1 = vld [vmem:[%s933_s0 + $0x8] sm:$0xf]  ;;  %v610_v6 = vld [vmem:[%s934_s3 + $0xc] ss:$16 sps:$4 sm:$0xff]   ;;  %329 = vmatprep.mubr.bf16.mxu0 %v710_v43  ;;  %380 = vmatprep.mubr.bf16.mxu1 %v710_v43 }
   0x2   :  { %v605_v2 = vunpack.c.l.bf16 %v604_v0  ;;  %v26_v3 = vunpack.c.l.bf16 %v23_v1  ;;  %v606_v4 = vunpack.c.h.bf16 %v604_v0  ;;  %v608_v5 = vld [vmem:[%s934_s3 + $0x4] ss:$16 sps:$4 sm:$0xff]   ;;  %v612_v7 = vld [vmem:[%s934_s3] ss:$16 sps:$4 sm:$0xff]   ;;  %v613_v8 = vld [vmem:[%s934_s3 + $0x8] ss:$16 sps:$4 sm:$0xff]   ;;  %348 = vmatprep.subr.bf16.mxu1 %v610_v6 }
   0x3   :  { %297 = vmatprep.subr.bf16.mxu0 %v608_v5  ;;  %v614_v9 = vld [vmem:[%s934_s3 + $0x24] ss:$16 sps:$4 sm:$0xff]   ;;  %349 = vmatpush1.bf16.msra.mxu1 %v613_v8  ;;  %v616_v10 = vld [vmem:[%s934_s3 + $0x2c] ss:$16 sps:$4 sm:$0xff]   ;;  %v618_v23 = vld [vmem:[%s934_s3 + $0x20] ss:$16 sps:$4 sm:$0xff]  }
   0x4   :  { %27 = vadd.xlane.f32.xlu0 %v605_v2  ;;  %31 = vadd.xlane.f32.xlu1 %v26_v3  ;;  %v619_v24 = vld [vmem:[%s934_s3 + $0x28] ss:$16 sps:$4 sm:$0xff]   ;;  %v620_v25 = vld [vmem:[%s934_s3 + $0x44] ss:$16 sps:$4 sm:$0xff]   ;;  %v622_v26 = vld [vmem:[%s934_s3 + $0x4c] ss:$16 sps:$4 sm:$0xff]  }
   0x5   :  { %298 = vmatpush1.bf16.msra.mxu0 %v612_v7  ;;  %350 = vmatprep.subr.bf16.mxu1 %v616_v10  ;;  %v624_v27 = vld [vmem:[%s934_s3 + $0x40] ss:$16 sps:$4 sm:$0xff]   ;;  %v625_v28 = vld [vmem:[%s934_s3 + $0x48] ss:$16 sps:$4 sm:$0xff]   ;;  %v626_v29 = vld [vmem:[%s934_s3 + $0x64] ss:$16 sps:$4 sm:$0xff]  }
   0x6   :  { %299 = vmatprep.subr.bf16.mxu0 %v614_v9  ;;  %v628_v30 = vld [vmem:[%s934_s3 + $0x6c] ss:$16 sps:$4 sm:$0xff]   ;;  %v630_v31 = vld [vmem:[%s934_s3 + $0x60] ss:$16 sps:$4 sm:$0xff]   ;;  %v631_v32 = vld [vmem:[%s934_s3 + $0x68] ss:$16 sps:$4 sm:$0xff]  }
   0x7   :  { %351 = vmatpush1.bf16.msra.mxu1 %v619_v24  ;;  %v632_v33 = vld [vmem:[%s934_s3 + $0x84] ss:$16 sps:$4 sm:$0xff]   ;;  %v634_v34 = vld [vmem:[%s934_s3 + $0x8c] ss:$16 sps:$4 sm:$0xff]   ;;  %v636_v35 = vld [vmem:[%s934_s3 + $0x80] ss:$16 sps:$4 sm:$0xff]  }
   0x8   :  { %29 = vadd.xlane.f32.xlu0 %v606_v4  ;;  %352 = vmatprep.subr.bf16.mxu1 %v622_v26  ;;  %v637_v36 = vld [vmem:[%s934_s3 + $0x88] ss:$16 sps:$4 sm:$0xff]   ;;  %v638_v37 = vld [vmem:[%s934_s3 + $0xa4] ss:$16 sps:$4 sm:$0xff]   ;;  %v640_v38 = vld [vmem:[%s934_s3 + $0xac] ss:$16 sps:$4 sm:$0xff]  }
   0x9   :  { %300 = vmatpush1.bf16.msra.mxu0 %v618_v23  ;;  %v642_v39 = vld [vmem:[%s934_s3 + $0xa0] ss:$16 sps:$4 sm:$0xff]   ;;  %v643_v40 = vld [vmem:[%s934_s3 + $0xa8] ss:$16 sps:$4 sm:$0xff]   ;;  %v644_v41 = vld [vmem:[%s934_s3 + $0xc4] ss:$16 sps:$4 sm:$0xff]  }
   0xa   :  { %301 = vmatprep.subr.bf16.mxu0 %v620_v25  ;;  %v646_v42 = vld [vmem:[%s934_s3 + $0xcc] ss:$16 sps:$4 sm:$0xff]   ;;  %v648_v44 = vld [vmem:[%s934_s3 + $0xc0] ss:$16 sps:$4 sm:$0xff]   ;;  %v649_v45 = vld [vmem:[%s934_s3 + $0xc8] ss:$16 sps:$4 sm:$0xff]  }
   0xb   :  { %353 = vmatpush1.bf16.msra.mxu1 %v625_v28  ;;  %v650_v46 = vld [vmem:[%s934_s3 + $0xe4] ss:$16 sps:$4 sm:$0xff]   ;;  %v652_v47 = vld [vmem:[%s934_s3 + $0xec] ss:$16 sps:$4 sm:$0xff]   ;;  %v654_v48 = vld [vmem:[%s934_s3 + $0xe0] ss:$16 sps:$4 sm:$0xff]  }
   0xc   :  { %354 = vmatprep.subr.bf16.mxu1 %v628_v30  ;;  %v655_v49 = vld [vmem:[%s934_s3 + $0xe8] ss:$16 sps:$4 sm:$0xff]   ;;  %v545_v61 = vld [vmem:[%s935_s1] ss:$0 sm:$0xff] }
   0xd   :  { %302 = vmatpush1.bf16.msra.mxu0 %v624_v27 }
   0xe   :  { %303 = vmatprep.subr.bf16.mxu0 %v626_v29 }
   0xf   :  { %355 = vmatpush1.bf16.msra.mxu1 %v631_v32 }
  0x10   :  { %356 = vmatprep.subr.bf16.mxu1 %v634_v34 }
  0x11   :  { %304 = vmatpush1.bf16.msra.mxu0 %v630_v31 }
  0x12   :  { %305 = vmatprep.subr.bf16.mxu0 %v632_v33 }
  0x13   :  { %357 = vmatpush1.bf16.msra.mxu1 %v637_v36 }
  0x14   :  { %358 = vmatprep.subr.bf16.mxu1 %v640_v38 }
  0x15   :  { %306 = vmatpush1.bf16.msra.mxu0 %v636_v35 }
  0x16   :  { %307 = vmatprep.subr.bf16.mxu0 %v638_v37 }
  0x17   :  { %359 = vmatpush1.bf16.msra.mxu1 %v643_v40 }
  0x18   :  { %360 = vmatprep.subr.bf16.mxu1 %v646_v42 }
  0x19   :  { %308 = vmatpush1.bf16.msra.mxu0 %v642_v39 }
  0x1a   :  { %309 = vmatprep.subr.bf16.mxu0 %v644_v41 }
  0x1b   :  { %361 = vmatpush1.bf16.msra.mxu1 %v649_v45 }
  0x1c   :  { %362 = vmatprep.subr.bf16.mxu1 %v652_v47 }
  0x1d   :  { %310 = vmatpush1.bf16.msra.mxu0 %v648_v44 }
  0x1e   :  { %311 = vmatprep.subr.bf16.mxu0 %v650_v46 }
  0x1f   :  { %363 = vmatpush1.bf16.msra.mxu1 %v655_v49 }
  0x21   :  { %312 = vmatpush1.bf16.msra.mxu0 %v654_v48 }
  0x91   :  { %v28_v11 = vpop.xlane.xlu0 %27  ;;  %v32_v12 = vpop.xlane.xlu1 %31 }
  0x92   :  { %v34_v13 = vmul.f32 0.0078125, %v28_v11  ;;  %v36_v14 = vmul.f32 0.0078125, %v32_v12  ;;  %v117_v11 = vlaneseq }
  0x94   :  { %v765_v15 = vsub.f32 %v605_v2, %v34_v13  ;;  %v767_v16 = vsub.f32 %v26_v3, %v36_v14  ;;  %v546_v2 = vld [vmem:[%s936_s2] ss:$0 sm:$0xff]  ;;  %v118_v12 = vshrl.u32 %v117_v11, 7 }
  0x95   :  { %v30_v17 = vpop.xlane.xlu0 %29 }
  0x96   :  { %v35_v18 = vmul.f32 0.0078125, %v30_v17  ;;  %v40_v19 = vmul.f32 %v765_v15, %v765_v15  ;;  %v42_v21 = vmul.f32 %v767_v16, %v767_v16  ;;  %v119_v13 = vsub.s32 0, %v118_v12 }
  0x97   :  { %v127_v14 = vsub.s32 2, %v118_v12  ;;  %v131_v17 = vsub.s32 3, %v118_v12 }
  0x98   :  { %v771_v20 = vsub.f32 %v606_v4, %v35_v18  ;;  %43 = vadd.xlane.f32.xlu1 %v40_v19 }
  0x9a   :  { %v41_v22 = vmul.f32 %v771_v20, %v771_v20 }
  0x9c   :  { %47 = vadd.xlane.f32.xlu1 %v42_v21  ;;  %45 = vadd.xlane.f32.xlu0 %v41_v22 }
 0x125   :  { %v44_v50 = vpop.xlane.xlu1 %43 }
 0x126   :  { %v49_v51 = vmul.f32 0.0078125, %v44_v50 }
 0x128   :  { %v52_v52 = vadd.f32 1e-05, %v49_v51 }
 0x129   :  { %v48_v53 = vpop.xlane.xlu1 %47  ;;  %v46_v54 = vpop.xlane.xlu0 %45 }
 0x12a   :  { %656 = vrsqrt.f32 %v52_v52  ;;  %v51_v55 = vmul.f32 0.0078125, %v48_v53  ;;  %v50_v56 = vmul.f32 0.0078125, %v46_v54 }
 0x12c   :  { %v54_v57 = vadd.f32 1e-05, %v51_v55  ;;  %v53_v58 = vadd.f32 1e-05, %v50_v56 }
 0x12e   :  { %658 = vrsqrt.f32 %v54_v57 }
 0x12f   :  { %660 = vrsqrt.f32 %v53_v58 }
 0x134   :  { %v657_v59 = vpop.eup %656 }
 0x135   :  { %v58_v60 = vmul.f32 %v657_v59, %v765_v15  ;;  %v115_v15 = vld [vmem:[%s937_s4] sm:$0xf] }
 0x136   :  { %v120_v18 = vrot.slane %v115_v15, %v119_v13  ;;  %v128_v19 = vrot.slane %v115_v15, %v127_v14  ;;  %v132_v21 = vrot.slane %v115_v15, %v131_v17 }
 0x137   :  { %v68_v1 = vmul.f32 %v545_v61, %v58_v60 }
 0x138   :  { %v659_v62 = vpop.eup %658 }
 0x139   :  { %v661_v63 = vpop.eup %660  ;;  %v60_v4 = vmul.f32 %v659_v62, %v767_v16  ;;  %v78_v5 = vadd.f32 %v546_v2, %v68_v1  ;;  %v123_v16 = vsub.s32 1, %v118_v12 }
 0x13a   :  { %v59_v0 = vmul.f32 %v661_v63, %v771_v20 }
 0x13b   :  { %v70_v8 = vmul.f32 %v545_v61, %v60_v4  ;;  %v124_v20 = vrot.slane %v115_v15, %v123_v16 }
 0x13c   :  { %v69_v3 = vmul.f32 %v545_v61, %v59_v0 }
 0x13d   :  { %v80_v9 = vadd.f32 %v546_v2, %v70_v8 }
 0x13e   :  { %v79_v6 = vadd.f32 %v546_v2, %v69_v3 }
 0x13f   :  { %v82_v10 = vpack.c.bf16 %v80_v9, %v80_v9 }
 0x140   :  { %v81_v7 = vpack.c.bf16 %v79_v6, %v78_v5 }
 0x142   :  { %330 = vmatmul.mubr.bf16.vlgmr.msra.gmra.mrb[0].mxu0 %v81_v7  ;;  %381 = vmatmul.mubr.bf16.vlgmr.msra.gmra.mrb[0].mxu1 %v81_v7 }
 0x143   :  { %339 = vmatprep.mubr.bf16.mxu0 %v710_v43  ;;  %390 = vmatprep.mubr.bf16.mxu1 %v710_v43 }
 0x14a   :  { %340 = vmatmul.mubr.bf16.gmra.mrb[4].mxu0 %v82_v10  ;;  %391 = vmatmul.mubr.bf16.gmra.mrb[4].mxu1 %v82_v10 }
 0x215   :  { %v331_v22 = vpop.f32.mrb[0].mxu0  ;;  %v382_v23 = vpop.f32.mrb[0].mxu1 }
 0x216   :  { %v867_v24 = vadd.f32 %v331_v22, %v120_v18  ;;  %v869_v25 = vadd.f32 %v382_v23, %v128_v19  ;;  %v333_v26 = vpop.f32.mrb[1].mxu0  ;;  %v384_v27 = vpop.f32.mrb[1].mxu1 }
 0x217   :  { %v871_v28 = vadd.f32 %v333_v26, %v124_v20  ;;  %v873_v29 = vadd.f32 %v384_v27, %v132_v21  ;;  %v335_v30 = vpop.f32.mrb[2].mxu0  ;;  %v386_v31 = vpop.f32.mrb[2].mxu1 }
 0x218   :  { %v579_v32 = vmul.f32 -1.702, %v867_v24  ;;  %v581_v33 = vmul.f32 -1.702, %v869_v25  ;;  %v877_v34 = vadd.f32 %v335_v30, %v120_v18  ;;  %v879_v35 = vadd.f32 %v386_v31, %v128_v19  ;;  %v337_v36 = vpop.f32.mrb[3].mxu0  ;;  %v388_v37 = vpop.f32.mrb[3].mxu1 }
 0x219   :  { %v580_v38 = vmul.f32 -1.702, %v871_v28  ;;  %v582_v39 = vmul.f32 -1.702, %v873_v29  ;;  %v883_v40 = vadd.f32 %v337_v36, %v124_v20  ;;  %v885_v41 = vadd.f32 %v388_v37, %v132_v21 }
 0x21a   :  { %v423_v42 = vmul.f32 1.442695, %v579_v32  ;;  %v427_v43 = vmul.f32 1.442695, %v581_v33  ;;  %v583_v44 = vmul.f32 -1.702, %v877_v34 }
 0x21b   :  { %v425_v45 = vmul.f32 1.442695, %v580_v38  ;;  %v429_v46 = vmul.f32 1.442695, %v582_v39  ;;  %v585_v47 = vmul.f32 -1.702, %v879_v35 }
 0x21c   :  { %662 = vpow2.f32 %v423_v42  ;;  %v431_v48 = vmul.f32 1.442695, %v583_v44  ;;  %v584_v49 = vmul.f32 -1.702, %v883_v40  ;;  %v586_v50 = vmul.f32 -1.702, %v885_v41 }
 0x21d   :  { %664 = vpow2.f32 %v427_v43  ;;  %v435_v51 = vmul.f32 1.442695, %v585_v47  ;;  %v341_v52 = vpop.f32.mrb[4].mxu0  ;;  %v392_v53 = vpop.f32.mrb[4].mxu1 }
 0x21e   :  { %666 = vpow2.f32 %v425_v45  ;;  %v433_v54 = vmul.f32 1.442695, %v584_v49  ;;  %v437_v55 = vmul.f32 1.442695, %v586_v50  ;;  %v891_v56 = vadd.f32 %v341_v52, %v120_v18  ;;  %v343_v57 = vpop.f32.mrb[5].mxu0  ;;  %v394_v58 = vpop.f32.mrb[5].mxu1 }
 0x21f   :  { %668 = vpow2.f32 %v429_v46  ;;  %v893_v59 = vadd.f32 %v392_v53, %v128_v19  ;;  %v895_v60 = vadd.f32 %v343_v57, %v124_v20  ;;  %v897_v61 = vadd.f32 %v394_v58, %v132_v21  ;;  %v345_v62 = vpop.f32.mrb[6].mxu0  ;;  %v396_v63 = vpop.f32.mrb[6].mxu1 }
 0x220   :  { %670 = vpow2.f32 %v431_v48  ;;  %v587_v0 = vmul.f32 -1.702, %v891_v56  ;;  %v346_v1 = vpop.f32.mrb[7].mxu0  ;;  %v397_v2 = vpop.f32.mrb[7].mxu1 }
 0x221   :  { %672 = vpow2.f32 %v435_v51  ;;  %v589_v3 = vmul.f32 -1.702, %v893_v59  ;;  %v588_v4 = vmul.f32 -1.702, %v895_v60  ;;  %v590_v5 = vmul.f32 -1.702, %v897_v61 }
 0x222   :  { %674 = vpow2.f32 %v433_v54  ;;  %v439_v6 = vmul.f32 1.442695, %v587_v0 }
 0x223   :  { %676 = vpow2.f32 %v437_v55  ;;  %v443_v7 = vmul.f32 1.442695, %v589_v3  ;;  %v441_v8 = vmul.f32 1.442695, %v588_v4  ;;  %v445_v9 = vmul.f32 1.442695, %v590_v5 }
 0x224   :  { %678 = vpow2.f32 %v439_v6 }
 0x225   :  { %680 = vpow2.f32 %v443_v7 }
 0x226   :  { %v663_v10 = vpop.eup %662  ;;  %682 = vpow2.f32 %v441_v8 }
 0x227   :  { %v665_v11 = vpop.eup %664  ;;  %v447_v12 = vadd.f32 1.0, %v663_v10  ;;  %684 = vpow2.f32 %v445_v9 }
 0x228   :  { %v667_v13 = vpop.eup %666  ;;  %v449_v14 = vadd.f32 1.0, %v665_v11 }
 0x229   :  { %v669_v15 = vpop.eup %668  ;;  %686 = vrcp.f32 %v447_v12  ;;  %v448_v16 = vadd.f32 1.0, %v667_v13 }
 0x22a   :  { %v671_v17 = vpop.eup %670  ;;  %688 = vrcp.f32 %v449_v14  ;;  %v450_v18 = vadd.f32 1.0, %v669_v15 }
 0x22b   :  { %v673_v19 = vpop.eup %672  ;;  %690 = vrcp.f32 %v448_v16  ;;  %v451_v20 = vadd.f32 1.0, %v671_v17 }
 0x22c   :  { %v675_v21 = vpop.eup %674  ;;  %692 = vrcp.f32 %v450_v18  ;;  %v453_v22 = vadd.f32 1.0, %v673_v19 }
 0x22d   :  { %v677_v23 = vpop.eup %676  ;;  %694 = vrcp.f32 %v451_v20  ;;  %v452_v26 = vadd.f32 1.0, %v675_v21 }
 0x22e   :  { %v679_v27 = vpop.eup %678  ;;  %696 = vrcp.f32 %v453_v22  ;;  %v454_v30 = vadd.f32 1.0, %v677_v23 }
 0x22f   :  { %v681_v31 = vpop.eup %680  ;;  %698 = vrcp.f32 %v452_v26  ;;  %v455_v32 = vadd.f32 1.0, %v679_v27 }
 0x230   :  { %v683_v33 = vpop.eup %682  ;;  %700 = vrcp.f32 %v454_v30  ;;  %v457_v36 = vadd.f32 1.0, %v681_v31 }
 0x231   :  { %v685_v37 = vpop.eup %684  ;;  %702 = vrcp.f32 %v455_v32  ;;  %v456_v38 = vadd.f32 1.0, %v683_v33 }
 0x232   :  { %704 = vrcp.f32 %v457_v36  ;;  %v458_v39 = vadd.f32 1.0, %v685_v37 }
 0x233   :  { %v687_v42 = vpop.eup %686  ;;  %706 = vrcp.f32 %v456_v38 }
 0x234   :  { %v689_v43 = vpop.eup %688  ;;  %v483_v44 = vmul.f32 %v687_v42, %v867_v24  ;;  %708 = vrcp.f32 %v458_v39 }
 0x235   :  { %v691_v45 = vpop.eup %690  ;;  %v485_v46 = vmul.f32 %v689_v43, %v869_v25 }
 0x236   :  { %v693_v47 = vpop.eup %692  ;;  %v484_v48 = vmul.f32 %v691_v45, %v871_v28 }
 0x237   :  { %v695_v49 = vpop.eup %694  ;;  %v486_v50 = vmul.f32 %v693_v47, %v873_v29 }
 0x238   :  { %v697_v51 = vpop.eup %696  ;;  %v597_v52 = vpack.c.bf16 %v484_v48, %v483_v44  ;;  %v487_v53 = vmul.f32 %v695_v49, %v877_v34 }
 0x239   :  { %v699_v54 = vpop.eup %698  ;;  %v598_v55 = vpack.c.bf16 %v486_v50, %v485_v46  ;;  %v489_v57 = vmul.f32 %v697_v51, %v879_v35 }
 0x23a   :  { %v701_v58 = vpop.eup %700  ;;  %535 = vst [vmem:[%s938_s5] sm:$0xff] %v597_v52  ;;  %v488_v24 = vmul.f32 %v699_v54, %v883_v40 }
 0x23b   :  { %v703_v25 = vpop.eup %702  ;;  %536 = vst [vmem:[%s938_s5 + $0x8] sm:$0xff] %v598_v55  ;;  %v490_v28 = vmul.f32 %v701_v58, %v885_v41 }
 0x23c   :  { %v705_v29 = vpop.eup %704  ;;  %v599_v34 = vpack.c.bf16 %v488_v24, %v487_v53  ;;  %v491_v62 = vmul.f32 %v703_v25, %v891_v56 }
 0x23d   :  { %v707_v63 = vpop.eup %706  ;;  %v600_v35 = vpack.c.bf16 %v490_v28, %v489_v57  ;;  %v493_v0 = vmul.f32 %v705_v29, %v893_v59 }
 0x23e   :  { %v709_v1 = vpop.eup %708  ;;  %537 = vst [vmem:[%s938_s5 + $0x10] sm:$0xff] %v599_v34  ;;  %v492_v40 = vmul.f32 %v707_v63, %v895_v60 }
 0x23f   :  { %538 = vst [vmem:[%s938_s5 + $0x18] sm:$0xff] %v600_v35  ;;  %v494_v41 = vmul.f32 %v709_v1, %v897_v61 }
 0x240   :  { %v601_v2 = vpack.c.bf16 %v492_v40, %v491_v62 }
 0x241   :  { %v602_v3 = vpack.c.bf16 %v494_v41, %v493_v0 }
 0x242   :  { %539 = vst [vmem:[%s938_s5 + $0x20] sm:$0xff] %v601_v2 }
 0x243   :  { %540 = vst [vmem:[%s938_s5 + $0x28] sm:$0xff] %v602_v3 }

// kernel: clip_base_patch16_224_1P_forward.18
= control target key start
LH: loop header
LB: loop body
LE: loop exit
PB: predicated region body
PF: predicated region fallthrough
CT: control target
= control target key end

     0   :  { %s779_s1 = inlined_call_operand.vmem [shape: bf16[512,128], index: 1, kind: input, shape index: {}]   ;;  %s780_s0 = inlined_call_operand.vmem [shape: bf16[24,512], index: 0, kind: input, shape index: {}]   ;;  %s781_s2 = inlined_call_operand.vmem [shape: f32[1,128], index: 2, kind: input, shape index: {}]   ;;  %s782_s3 = inlined_call_operand.vmem [shape: bf16[24,128], index: 3, kind: input, shape index: {}]   ;;  %s783_s4 = inlined_call_operand.vmem [shape: bf16[24,128], index: 4, kind: output, shape index: {}]  }
   0x1   :  { %v583_v0 = vld [vmem:[%s779_s1 + $0x40] sm:$0xff]   ;;  %v587_v4 = vld [vmem:[%s779_s1 + $0x48] sm:$0xff]   ;;  %v591_v8 = vld [vmem:[%s779_s1 + $0x50] sm:$0xff]  }
   0x2   :  { %v584_v1 = vld [vmem:[%s779_s1 + $0xc0] sm:$0xff]   ;;  %527 = vmatprep.subr.bf16.mxu0 %v583_v0  ;;  %v588_v5 = vld [vmem:[%s779_s1 + $0xc8] sm:$0xff]   ;;  %v592_v9 = vld [vmem:[%s779_s1 + $0xd0] sm:$0xff]  }
   0x3   :  { %v585_v2 = vld [vmem:[%s779_s1] sm:$0xff]   ;;  %555 = vmatprep.subr.bf16.mxu1 %v584_v1  ;;  %v589_v6 = vld [vmem:[%s779_s1 + $0x8] sm:$0xff]   ;;  %v593_v10 = vld [vmem:[%s779_s1 + $0x10] sm:$0xff]  }
   0x4   :  { %v586_v3 = vld [vmem:[%s779_s1 + $0x80] sm:$0xff]   ;;  %528 = vmatpush3.bf16.msra.mxu0 %v585_v2  ;;  %v590_v7 = vld [vmem:[%s779_s1 + $0x88] sm:$0xff]   ;;  %v594_v11 = vld [vmem:[%s779_s1 + $0x90] sm:$0xff]  }
   0x5   :  { %556 = vmatpush3.bf16.msra.mxu1 %v586_v3  ;;  %529 = vmatprep.subr.bf16.mxu0 %v587_v4  ;;  %v595_v12 = vld [vmem:[%s779_s1 + $0x58] sm:$0xff]   ;;  %v599_v16 = vld [vmem:[%s779_s1 + $0x60] sm:$0xff]   ;;  %v603_v20 = vld [vmem:[%s779_s1 + $0x68] sm:$0xff]  }
   0x6   :  { %557 = vmatprep.subr.bf16.mxu1 %v588_v5  ;;  %v596_v13 = vld [vmem:[%s779_s1 + $0xd8] sm:$0xff]   ;;  %v600_v17 = vld [vmem:[%s779_s1 + $0xe0] sm:$0xff]   ;;  %v604_v21 = vld [vmem:[%s779_s1 + $0xe8] sm:$0xff]  }
   0x7   :  { %v597_v14 = vld [vmem:[%s779_s1 + $0x18] sm:$0xff]   ;;  %v601_v18 = vld [vmem:[%s779_s1 + $0x20] sm:$0xff]   ;;  %v605_v22 = vld [vmem:[%s779_s1 + $0x28] sm:$0xff]  }
   0x8   :  { %530 = vmatpush3.bf16.msra.mxu0 %v589_v6  ;;  %v598_v15 = vld [vmem:[%s779_s1 + $0x98] sm:$0xff]   ;;  %v602_v19 = vld [vmem:[%s779_s1 + $0xa0] sm:$0xff]   ;;  %v606_v23 = vld [vmem:[%s779_s1 + $0xa8] sm:$0xff]  }
   0x9   :  { %558 = vmatpush3.bf16.msra.mxu1 %v590_v7  ;;  %531 = vmatprep.subr.bf16.mxu0 %v591_v8  ;;  %v607_v24 = vld [vmem:[%s779_s1 + $0x70] sm:$0xff]   ;;  %v611_v28 = vld [vmem:[%s779_s1 + $0x78] sm:$0xff]   ;;  %v32_v36 = vld [vmem:[%s780_s0 + $0x20] sm:$0xff] }
   0xa   :  { %559 = vmatprep.subr.bf16.mxu1 %v592_v9  ;;  %v608_v25 = vld [vmem:[%s779_s1 + $0xf0] sm:$0xff]   ;;  %v612_v29 = vld [vmem:[%s779_s1 + $0xf8] sm:$0xff]   ;;  %v476_v37 = vcombine.high %v32_v36, %v32_v36  ;;  %v33_v38 = vld [vmem:[%s780_s0 + $0x28] sm:$0xff]  ;;  %v475_v40 = vcombine.low %v32_v36, %v32_v36 }
   0xb   :  { %v609_v26 = vld [vmem:[%s779_s1 + $0x30] sm:$0xff]   ;;  %v613_v30 = vld [vmem:[%s779_s1 + $0x38] sm:$0xff]   ;;  %v478_v39 = vcombine.high %v33_v38, %v33_v38  ;;  %v477_v41 = vcombine.low %v33_v38, %v33_v38  ;;  %v511_v51 = vld [vmem:[%s781_s2] ss:$0 sm:$0xff] }
   0xc   :  { %532 = vmatpush3.bf16.msra.mxu0 %v593_v10  ;;  %v610_v27 = vld [vmem:[%s779_s1 + $0xb0] sm:$0xff]   ;;  %v614_v31 = vld [vmem:[%s779_s1 + $0xb8] sm:$0xff]   ;;  %v519_v52 = vld [vmem:[%s782_s3] sm:$0xff]  }
   0xd   :  { %560 = vmatpush3.bf16.msra.mxu1 %v594_v11  ;;  %533 = vmatprep.subr.bf16.mxu0 %v595_v12  ;;  %v615_v32 = vld [vmem:[%s780_s0] ss:$16 sps:$4 sm:$0xff]   ;;  %v617_v33 = vld [vmem:[%s780_s0 + $0x4] ss:$16 sps:$4 sm:$0xff]   ;;  %v618_v34 = vld [vmem:[%s780_s0 + $0x8] ss:$16 sps:$4 sm:$0xff]   ;;  %v520_v58 = vunpack.c.l.bf16 %v519_v52  ;;  %v521_v60 = vunpack.c.h.bf16 %v519_v52 }
   0xe   :  { %561 = vmatprep.subr.bf16.mxu1 %v596_v13  ;;  %v620_v35 = vld [vmem:[%s780_s0 + $0xc] ss:$16 sps:$4 sm:$0xff]   ;;  %356 = vmatprep.mubr.bf16.mxu0 %v617_v33  ;;  %v444_v3 = vld [vmem:[%s782_s3 + $0x8] sm:$0xf] }
   0xf   :  { %404 = vmatprep.mubr.bf16.mxu1 %v620_v35  ;;  %v447_v13 = vunpack.c.l.bf16 %v444_v3 }
  0x10   :  { %534 = vmatpush3.bf16.msra.mxu0 %v597_v14 }
  0x11   :  { %562 = vmatpush3.bf16.msra.mxu1 %v598_v15  ;;  %535 = vmatprep.subr.bf16.mxu0 %v599_v16 }
  0x12   :  { %563 = vmatprep.subr.bf16.mxu1 %v600_v17 }
  0x14   :  { %536 = vmatpush3.bf16.msra.mxu0 %v601_v18 }
  0x15   :  { %564 = vmatpush3.bf16.msra.mxu1 %v602_v19  ;;  %537 = vmatprep.subr.bf16.mxu0 %v603_v20 }
  0x16   :  { %565 = vmatprep.subr.bf16.mxu1 %v604_v21 }
  0x18   :  { %538 = vmatpush3.bf16.msra.mxu0 %v605_v22 }
  0x19   :  { %566 = vmatpush3.bf16.msra.mxu1 %v606_v23  ;;  %539 = vmatprep.subr.bf16.mxu0 %v607_v24 }
  0x1a   :  { %567 = vmatprep.subr.bf16.mxu1 %v608_v25 }
  0x1c   :  { %540 = vmatpush3.bf16.msra.mxu0 %v609_v26 }
  0x1d   :  { %568 = vmatpush3.bf16.msra.mxu1 %v610_v27  ;;  %541 = vmatprep.subr.bf16.mxu0 %v611_v28 }
  0x1e   :  { %569 = vmatprep.subr.bf16.mxu1 %v612_v29 }
  0x20   :  { %542 = vmatpush3.bf16.msra.mxu0 %v613_v30 }
  0x21   :  { %570 = vmatpush3.bf16.msra.mxu1 %v614_v31 }
  0x23   :  { %357 = vmatmul.mubr.bf16.vlgmr.msra.gmra.mrb[0].mxu0 %v615_v32 }
  0x24   :  { %405 = vmatmul.mubr.bf16.vlgmr.msra.gmra.mrb[0].mxu1 %v618_v34  ;;  %364 = vmatprep.mubr.bf16.mxu0 %v476_v37 }
  0x25   :  { %412 = vmatprep.mubr.bf16.mxu1 %v478_v39 }
  0x2b   :  { %365 = vmatmul.mubr.bf16.gmra.mrb[4].mxu0 %v475_v40 }
  0x2c   :  { %413 = vmatmul.mubr.bf16.gmra.mrb[4].mxu1 %v477_v41 }
  0xf6   :  { %v543_v42 = vpop.f32.mrb[0].mxu0 }
  0xf7   :  { %v571_v43 = vpop.f32.mrb[0].mxu1  ;;  %v544_v44 = vpop.f32.mrb[1].mxu0 }
  0xf8   :  { %v545_v45 = vadd.f32 %v544_v44, %v543_v42  ;;  %v572_v46 = vpop.f32.mrb[1].mxu1  ;;  %v546_v47 = vpop.f32.mrb[2].mxu0 }
  0xf9   :  { %v573_v48 = vadd.f32 %v572_v46, %v571_v43  ;;  %v574_v49 = vpop.f32.mrb[2].mxu1  ;;  %v547_v50 = vpop.f32.mrb[3].mxu0 }
  0xfa   :  { %v548_v53 = vadd.f32 %v547_v50, %v546_v47  ;;  %v575_v54 = vpop.f32.mrb[3].mxu1 }
  0xfb   :  { %v407_v55 = vadd.f32 %v573_v48, %v545_v45  ;;  %v576_v56 = vadd.f32 %v575_v54, %v574_v49 }
  0xfd   :  { %v439_v57 = vadd.f32 %v511_v51, %v407_v55  ;;  %v410_v59 = vadd.f32 %v576_v56, %v548_v53 }
  0xfe   :  { %v549_v61 = vpop.f32.mrb[4].mxu0 }
  0xff   :  { %v440_v62 = vadd.f32 %v511_v51, %v410_v59  ;;  %v577_v63 = vpop.f32.mrb[4].mxu1  ;;  %v550_v0 = vpop.f32.mrb[5].mxu0  ;;  %v448_v5 = vadd.f32 %v520_v58, %v439_v57 }
 0x100   :  { %v551_v1 = vadd.f32 %v550_v0, %v549_v61  ;;  %v578_v2 = vpop.f32.mrb[5].mxu1  ;;  %v552_v4 = vpop.f32.mrb[6].mxu0 }
 0x101   :  { %v449_v6 = vadd.f32 %v521_v60, %v440_v62  ;;  %v579_v7 = vadd.f32 %v578_v2, %v577_v63  ;;  %v580_v8 = vpop.f32.mrb[6].mxu1  ;;  %v553_v9 = vpop.f32.mrb[7].mxu0 }
 0x102   :  { %v581_v10 = vpop.f32.mrb[7].mxu1 }
 0x103   :  { %v525_v11 = vpack.c.bf16 %v449_v6, %v448_v5  ;;  %v415_v12 = vadd.f32 %v579_v7, %v551_v1 }
 0x105   :  { %v441_v14 = vadd.f32 %v511_v51, %v415_v12  ;;  %526 = vst [vmem:[%s783_s4] sm:$0xff] %v525_v11  }
 0x107   :  { %v450_v15 = vadd.f32 %v447_v13, %v441_v14 }
 0x109   :  { %v517_v16 = vpack.c.bf16 %v450_v15, %v450_v15 }
 0x10b   :  { %466 = vst [vmem:[%s783_s4 + $0x8] sm:$0xf] %v517_v16 }

</bundles_post_ra>
